<compile_context>
chip_gen: v7x
topology: tpu7x:2x2x1
jax: 0.10.0
libtpu: 0.0.40
codegen_flags: <defaults>
</compile_context>

<pallas_src>
import math
from functools import partial

import numpy as np
import jax
import jax.numpy as jnp
from jax import lax
from jax.experimental import pallas as pl
from jax.experimental.pallas import tpu as pltpu


# ----------------------------------------------------------------------------
# Host-side glue: motion-blur kernel (kornia.get_motion_kernel2d, mode='nearest')
# ----------------------------------------------------------------------------
def _motion_kernel_2d(ksize: int, angle_deg: float, direction: float = 0.0) -> np.ndarray:
    """Replicates kornia get_motion_kernel2d(ksize, angle, direction, mode='nearest')."""
    d = (float(np.clip(direction, -1.0, 1.0)) + 1.0) / 2.0
    line = d + ((1.0 - 2.0 * d) / (ksize - 1)) * np.arange(ksize, dtype=np.float64)
    base = np.zeros((ksize, ksize), dtype=np.float64)
    base[ksize // 2, :] = line

    # kornia.rotate: nearest interpolation, align_corners=True, zero padding.
    c = (ksize - 1) / 2.0
    th = math.radians(angle_deg)
    ca, sa = math.cos(th), math.sin(th)
    ys, xs = np.meshgrid(np.arange(ksize), np.arange(ksize), indexing="ij")
    dx = xs - c
    dy = ys - c
    sx = ca * dx - sa * dy + c          # inverse rotation (dst -> src)
    sy = sa * dx + ca * dy + c
    ix = np.rint(sx).astype(np.int64)   # round-half-even, like grid_sample nearest
    iy = np.rint(sy).astype(np.int64)
    valid = (ix >= 0) & (ix < ksize) & (iy >= 0) & (iy < ksize)
    rot = np.where(valid, base[np.clip(iy, 0, ksize - 1), np.clip(ix, 0, ksize - 1)], 0.0)
    s = rot.sum()
    assert s > 0.0, "degenerate motion kernel (all taps zero)"
    return (rot / s).astype(np.float32)


def _row_tap_table(kern: np.ndarray):
    """Group the sparse taps of the rotated-line kernel by distinct nonzero row.

    Returns
      roff: (R,) int32  row offsets (R = pow2-bucketed nonzero-row count, capped
                        at K -> only a handful of compile variants per severity;
                        padded slots have zero weight and offset 0)
      w:    (R, K) f32  dense per-row column weights
    """
    k = kern.shape[0]
    nz = np.nonzero(np.abs(kern).sum(axis=1) > 0.0)[0]
    r_true = max(1, len(nz))
    r_bucket = int(min(k, 2 ** int(math.ceil(math.log2(r_true)))))
    r_bucket = max(r_bucket, r_true)
    roff = np.zeros((r_bucket,), np.int32)
    w = np.zeros((r_bucket, k), np.float32)
    roff[: len(nz)] = nz.astype(np.int32)
    w[: len(nz), :] = kern[nz, :]
    return roff, w


# ----------------------------------------------------------------------------
# Pallas kernel: depthwise KxK correlation, zero padding, same output size
# ----------------------------------------------------------------------------
def _make_kernel(P: int, H: int, W: int, K: int, R: int, rs: int, Wp: int, use_mxu: bool):
    pad = K // 2
    Hp = H + 2 * pad
    n_strips = H // rs

    def kernel(roff_ref, tab_ref, x_ref, o_ref, xpad_ref):
        f32 = jnp.float32

        # ---- stage the block: zero ONLY the halo, copy the interior --------
        # Full coverage of the scratch every grid step (correct under megacore
        # "parallel" sharding); halo-only zeroing avoids the old
        # zero-everything-then-overwrite double store traffic.
        xpad_ref[:, 0:pad, :] = jnp.zeros((P, pad, Wp), f32)
        xpad_ref[:, pad + H:Hp, :] = jnp.zeros((P, Hp - H - pad, Wp), f32)
        xpad_ref[:, pad:pad + H, 0:pad] = jnp.zeros((P, H, pad), f32)
        xpad_ref[:, pad:pad + H, pad + W:Wp] = jnp.zeros((P, H, Wp - W - pad), f32)
        xpad_ref[:, pad:pad + H, pad:pad + W] = x_ref[...].astype(f32)

        def do_strip(r0):
            # Strip accumulator: sized (<= ~48 KiB) to stay in vregs; stored once.
            acc = jnp.zeros((P * rs, W if use_mxu else Wp), f32)
            for r in range(R):                        # static: R is pow2-bucketed
                base = r0 + roff_ref[r]               # ONE band load per distinct row
                band = xpad_ref[:, pl.ds(base, rs), :]          # (P, rs, Wp)
                band = band.reshape(P * rs, Wp)       # rs%8==0 (or P==1) -> layout-trivial
                if use_mxu:
                    # All K column taps of this row as one banded matmul on the
                    # MXU (contraction dim Wp is a multiple of 128).
                    acc = acc + jnp.dot(band, tab_ref[r],
                                        preferred_element_type=f32)
                else:
                    # Padded-width accumulator + static lane rolls: the shift
                    # runs on the XLU slot and co-issues with the VALU FMA; no
                    # per-tap materialized slice, no duplicate band loads.
                    for j in range(K):
                        shifted = band if j == 0 else pltpu.roll(band, shift=Wp - j, axis=1)
                        acc = acc + tab_ref[r, j] * shifted
            if not use_mxu:
                acc = acc[:, :W]                      # starts at lane 0 -> truncation only
            o_ref[:, pl.ds(r0, rs), :] = acc.reshape(P, rs, W).astype(o_ref.dtype)

        if n_strips == 1:
            do_strip(0)
        else:
            def body(s, carry):
                do_strip(pl.multiple_of(s * rs, rs))
                return carry
            lax.fori_loop(0, n_strips, body, 0)

    return kernel


# ----------------------------------------------------------------------------
# Wrapper: block/tile selection + pallas_call
# ----------------------------------------------------------------------------
def _vmem_capacity_bytes() -> int:
    try:
        return int(pltpu.get_tpu_info().vmem_capacity_bytes)
    except Exception:
        return 128 << 20          # v5e/v6e default if the query is unavailable


def _round_up(x: int, m: int) -> int:
    return ((x + m - 1) // m) * m


def _largest_divisor_le(n: int, cap: int) -> int:
    cap = max(1, min(n, cap))
    for d in range(cap, 0, -1):
        if n % d == 0:
            return d
    return 1


def _banded_from_w(w, Wp: int, W: int, K: int):
    """(R, K) per-row column weights -> (R, Wp, W) banded matrices (MXU path)."""
    diff = jnp.arange(Wp)[:, None] - jnp.arange(W)[None, :]      # input col - output col
    valid = (diff >= 0) & (diff < K)
    gathered = w[:, jnp.clip(diff, 0, K - 1)]                    # (R, Wp, W)
    return jnp.where(valid[None, :, :], gathered, 0.0).astype(jnp.float32)


@partial(jax.jit, static_argnames=("use_mxu",))
def _motion_blur_conv(img_nchw: jax.Array, roff: jax.Array, w: jax.Array, *, use_mxu: bool):
    N, C, H, W = img_nchw.shape
    R = roff.shape[0]
    K = w.shape[1]
    pad = K // 2
    Hp = H + 2 * pad
    Wp = _round_up(W + 2 * pad, 128)   # lane-aligned padded width (same vreg count)
    NC = N * C
    x = img_nchw.reshape(NC, H, W)
    itemsize = int(np.dtype(img_nchw.dtype).itemsize)

    # ---- per-generation VMEM budget (128 MiB v5e/v6e, 64 MiB v7x) ----------
    vmem_cap = _vmem_capacity_bytes()
    plan_budget = int(vmem_cap * 0.45)
    m_bytes = 2 * R * Wp * W * 4 if use_mxu else 0        # banded matrices (2x buffered)
    per_plane = 4 * H * W * itemsize + Hp * Wp * 4        # 2x in + 2x out blocks + scratch
    avail = max(per_plane, plan_budget - m_bytes - (2 << 20))
    cap = max(1, avail // per_plane)
    cap = min(cap, max(1, NC // 2))    # grid >= 2 so both v7x TensorCores get work
    if H % 8 != 0:
        P = 1                          # keep (P, rs, .) <-> (P*rs, .) reshapes layout-trivial
        rs = H
    else:
        P = _largest_divisor_le(NC, cap)
        # Strip rows: multiple of 8 sublanes, divides H, accumulator <= ~48 KiB.
        rs = 8
        for cand in range(8, H + 1, 8):
            if H % cand == 0 and P * cand * Wp * 4 <= (48 << 10):
                rs = cand

    kernel = _make_kernel(P, H, W, K, R, rs, Wp, use_mxu)

    if use_mxu:
        tab = _banded_from_w(w, Wp, W, K)                        # built on device
        tab_spec = pl.BlockSpec((R, Wp, W), lambda i: (0, 0, 0))
    else:
        tab = w
        tab_spec = pl.BlockSpec(memory_space=pltpu.MemorySpace.SMEM)

    out = pl.pallas_call(
        kernel,
        out_shape=jax.ShapeDtypeStruct((NC, H, W), img_nchw.dtype),
        grid=(NC // P,),
        in_specs=[
            pl.BlockSpec(memory_space=pltpu.MemorySpace.SMEM),   # roff (R,) int32
            tab_spec,                                            # per-row weights / banded matrices
            pl.BlockSpec((P, H, W), lambda i: (i, 0, 0)),        # P planes per step, no host pad
        ],
        out_specs=pl.BlockSpec((P, H, W), lambda i: (i, 0, 0)),
        scratch_shapes=[pltpu.VMEM((P, Hp, Wp), jnp.float32)],   # in-kernel zero padding
        compiler_params=pltpu.CompilerParams(
            dimension_semantics=("parallel",),                   # planes independent
            vmem_limit_bytes=int((vmem_cap * 3) // 4),
        ),
    )(roff, tab, x)
    return out.reshape(N, C, H, W)


# ----------------------------------------------------------------------------
# Module-equivalent wrapper
# ----------------------------------------------------------------------------
class MotionBlurPallas:
    """JAX/Pallas equivalent of torch_uncertainty MotionBlur (forward pass)."""

    batchable = True

    def __init__(self, severity: int, seed: int | None = None) -> None:
        if not isinstance(severity, int):
            raise TypeError("Severity must be an integer.")
        if not 0 <= severity <= 5:
            raise ValueError("Severity must be between 0 and 5.")
        self.severity = severity
        self.rng = np.random.default_rng(seed)
        self.radius = [3, 5, 8, 12, 15][severity - 1] if severity > 0 else 0

    def __repr__(self) -> str:
        return f"MotionBlur(severity={self.severity})"

    def __call__(self, img: jax.Array) -> jax.Array:
        if self.severity == 0:
            return img
        no_batch = img.ndim == 3
        if no_batch:
            img = img[None]
        ksize = 2 * self.radius + 1
        angle = float(self.rng.uniform(-45, 45))       # host RNG, like the torch module
        kern = _motion_kernel_2d(ksize, angle, direction=0.0)
        roff, w = _row_tap_table(kern)
        use_mxu = ksize >= 17                          # MXU banded matmul for severity >= 3
        out = _motion_blur_conv(img, jnp.asarray(roff), jnp.asarray(w), use_mxu=use_mxu)
        if no_batch:
            out = out[0]
        return out


# ----------------------------------------------------------------------------
# Self-test
# ----------------------------------------------------------------------------
def _conv_ref(x: np.ndarray, kern: np.ndarray) -> np.ndarray:
    K = kern.shape[0]
    p = K // 2
    H, W = x.shape[2], x.shape[3]
    xp = np.pad(x.astype(np.float64), ((0, 0), (0, 0), (p, p), (p, p)))
    out = np.zeros(x.shape, np.float64)
    for i in range(K):
        for j in range(K):
            out += kern[i, j] * xp[:, :, i:i + H, j:j + W]
    return out.astype(np.float32)


if __name__ == "__main__":
    # ---- severity 1 (K=7): VPU/XLU roll path --------------------------------
    key = jax.random.PRNGKey(0)
    img = jax.random.uniform(key, (2, 4, 16, 16), dtype=jnp.float32)  # NCHW
    blur = MotionBlurPallas(severity=1, seed=0)                       # radius=3 -> K=7
    out = jax.block_until_ready(blur(img))
    assert out.shape == img.shape and out.dtype == img.dtype
    assert bool(jnp.all(jnp.isfinite(out)))

    rng_ref = np.random.default_rng(0)                                # same rng stream
    kern = _motion_kernel_2d(2 * blur.radius + 1, float(rng_ref.uniform(-45, 45)), 0.0)
    ref = _conv_ref(np.asarray(img), kern)
    np.testing.assert_allclose(np.asarray(out), ref, rtol=1e-5, atol=1e-5)

    # ---- severity 4 (K=25): banded-matmul MXU path ---------------------------
    key2 = jax.random.PRNGKey(1)
    img2 = jax.random.uniform(key2, (2, 3, 64, 64), dtype=jnp.float32)
    blur2 = MotionBlurPallas(severity=4, seed=3)                      # radius=12 -> K=25
    out2 = jax.block_until_ready(blur2(img2))
    assert out2.shape == img2.shape and out2.dtype == img2.dtype
    assert bool(jnp.all(jnp.isfinite(out2)))

    rng_ref2 = np.random.default_rng(3)
    kern2 = _motion_kernel_2d(2 * blur2.radius + 1, float(rng_ref2.uniform(-45, 45)), 0.0)
    ref2 = _conv_ref(np.asarray(img2), kern2)
    # The MXU may evaluate the f32 matmul at bf16 input precision -> looser tol.
    np.testing.assert_allclose(np.asarray(out2), ref2, rtol=2e-2, atol=2e-2)

    print("KERNEL_OK")
</pallas_src>

<mosaic_0001>
module attributes {stable_mosaic.version = 11 : i64} {
  func.func @kernel(%arg0: i32, %arg1: memref<4xi32, #tpu.memory_space<smem>>, %arg2: memref<4x7xf32, #tpu.memory_space<smem>>, %arg3: memref<4x16x16xf32, #tpu.memory_space<vmem>>, %arg4: memref<4x16x16xf32, #tpu.memory_space<vmem>>, %arg5: memref<4x22x128xf32, #tpu.memory_space<vmem>>) attributes {dimension_semantics = [#tpu.dimension_semantics<parallel>], iteration_bounds = array<i64: 2>, scalar_prefetch = 0 : i64, scratch_operands = 1 : i64, tpu.core_type = #tpu.core_type<tc>, window_params = [{transform_indices = @transform_0, window_bounds = array<i64: 4>}, {transform_indices = @transform_1, window_bounds = array<i64: 4, 7>}, {transform_indices = @transform_2, window_bounds = array<i64: 4, 16, 16>}, {transform_indices = @transform_3, window_bounds = array<i64: 4, 16, 16>}]} {
    %cst = arith.constant 0.000000e+00 : f32
    %0 = vector.broadcast %cst : f32 to vector<4x3x128xf32>
    %c0 = arith.constant 0 : index
    %c0_0 = arith.constant 0 : index
    %c0_1 = arith.constant 0 : index
    %1 = vector.load %arg5[%c0, %c0_0, %c0_1] : memref<4x22x128xf32, #tpu.memory_space<vmem>>, vector<4x3x128xf32>
    tpu.vector_store %arg5[%c0, %c0_0, %c0_1], %0 {strides = array<i32>} : memref<4x22x128xf32, #tpu.memory_space<vmem>>, vector<4x3x128xf32>,
    %cst_2 = arith.constant 0.000000e+00 : f32
    %2 = vector.broadcast %cst_2 : f32 to vector<4x3x128xf32>
    %c0_3 = arith.constant 0 : index
    %c19 = arith.constant 19 : index
    %c0_4 = arith.constant 0 : index
    %3 = vector.load %arg5[%c0_3, %c19, %c0_4] : memref<4x22x128xf32, #tpu.memory_space<vmem>>, vector<4x3x128xf32>
    tpu.vector_store %arg5[%c0_3, %c19, %c0_4], %2 {strides = array<i32>} : memref<4x22x128xf32, #tpu.memory_space<vmem>>, vector<4x3x128xf32>,
    %cst_5 = arith.constant 0.000000e+00 : f32
    %4 = vector.broadcast %cst_5 : f32 to vector<4x16x3xf32>
    %c0_6 = arith.constant 0 : index
    %c3 = arith.constant 3 : index
    %c0_7 = arith.constant 0 : index
    %5 = vector.load %arg5[%c0_6, %c3, %c0_7] : memref<4x22x128xf32, #tpu.memory_space<vmem>>, vector<4x16x3xf32>
    tpu.vector_store %arg5[%c0_6, %c3, %c0_7], %4 {strides = array<i32>} : memref<4x22x128xf32, #tpu.memory_space<vmem>>, vector<4x16x3xf32>,
    %cst_8 = arith.constant 0.000000e+00 : f32
    %6 = vector.broadcast %cst_8 : f32 to vector<4x16x109xf32>
    %c0_9 = arith.constant 0 : index
    %c3_10 = arith.constant 3 : index
    %c19_11 = arith.constant 19 : index
    %7 = vector.load %arg5[%c0_9, %c3_10, %c19_11] : memref<4x22x128xf32, #tpu.memory_space<vmem>>, vector<4x16x109xf32>
    tpu.vector_store %arg5[%c0_9, %c3_10, %c19_11], %6 {strides = array<i32>} : memref<4x22x128xf32, #tpu.memory_space<vmem>>, vector<4x16x109xf32>,
    %c0_12 = arith.constant 0 : index
    %c0_13 = arith.constant 0 : index
    %c0_14 = arith.constant 0 : index
    %8 = vector.load %arg3[%c0_12, %c0_13, %c0_14] : memref<4x16x16xf32, #tpu.memory_space<vmem>>, vector<4x16x16xf32>
    %c0_15 = arith.constant 0 : index
    %c3_16 = arith.constant 3 : index
    %c3_17 = arith.constant 3 : index
    %9 = vector.load %arg5[%c0_15, %c3_16, %c3_17] : memref<4x22x128xf32, #tpu.memory_space<vmem>>, vector<4x16x16xf32>
    tpu.vector_store %arg5[%c0_15, %c3_16, %c3_17], %8 {strides = array<i32>} : memref<4x22x128xf32, #tpu.memory_space<vmem>>, vector<4x16x16xf32>,
    %cst_18 = arith.constant 0.000000e+00 : f32
    %10 = vector.broadcast %cst_18 : f32 to vector<64x128xf32>
    %c0_19 = arith.constant 0 : index
    %11 = memref.load %arg1[%c0_19] : memref<4xi32, #tpu.memory_space<smem>>
    %c0_i32 = arith.constant 0 : i32
    %12 = arith.addi %c0_i32, %11 : i32
    %c0_20 = arith.constant 0 : index
    %13 = arith.index_cast %12 : i32 to index
    %c0_21 = arith.constant 0 : index
    %14 = vector.load %arg5[%c0_20, %13, %c0_21] : memref<4x22x128xf32, #tpu.memory_space<vmem>>, vector<4x16x128xf32>
    %15 = vector.shape_cast %14 : vector<4x16x128xf32> to vector<64x128xf32>
    %c0_22 = arith.constant 0 : index
    %c0_23 = arith.constant 0 : index
    %16 = memref.load %arg2[%c0_22, %c0_23] : memref<4x7xf32, #tpu.memory_space<smem>>
    %17 = vector.broadcast %16 : f32 to vector<64x128xf32>
    %18 = arith.mulf %17, %15 : vector<64x128xf32>
    %19 = arith.addf %10, %18 : vector<64x128xf32>
    %c127_i32 = arith.constant 127 : i32
    %20 = tpu.dynamic_rotate %15 by %c127_i32 dim 1 : vector<64x128xf32>, i32 -> vector<64x128xf32>
    %c0_24 = arith.constant 0 : index
    %c1 = arith.constant 1 : index
    %21 = memref.load %arg2[%c0_24, %c1] : memref<4x7xf32, #tpu.memory_space<smem>>
    %22 = vector.broadcast %21 : f32 to vector<64x128xf32>
    %23 = arith.mulf %22, %20 : vector<64x128xf32>
    %24 = arith.addf %19, %23 : vector<64x128xf32>
    %c126_i32 = arith.constant 126 : i32
    %25 = tpu.dynamic_rotate %15 by %c126_i32 dim 1 : vector<64x128xf32>, i32 -> vector<64x128xf32>
    %c0_25 = arith.constant 0 : index
    %c2 = arith.constant 2 : index
    %26 = memref.load %arg2[%c0_25, %c2] : memref<4x7xf32, #tpu.memory_space<smem>>
    %27 = vector.broadcast %26 : f32 to vector<64x128xf32>
    %28 = arith.mulf %27, %25 : vector<64x128xf32>
    %29 = arith.addf %24, %28 : vector<64x128xf32>
    %c125_i32 = arith.constant 125 : i32
    %30 = tpu.dynamic_rotate %15 by %c125_i32 dim 1 : vector<64x128xf32>, i32 -> vector<64x128xf32>
    %c0_26 = arith.constant 0 : index
    %c3_27 = arith.constant 3 : index
    %31 = memref.load %arg2[%c0_26, %c3_27] : memref<4x7xf32, #tpu.memory_space<smem>>
    %32 = vector.broadcast %31 : f32 to vector<64x128xf32>
    %33 = arith.mulf %32, %30 : vector<64x128xf32>
    %34 = arith.addf %29, %33 : vector<64x128xf32>
    %c124_i32 = arith.constant 124 : i32
    %35 = tpu.dynamic_rotate %15 by %c124_i32 dim 1 : vector<64x128xf32>, i32 -> vector<64x128xf32>
    %c0_28 = arith.constant 0 : index
    %c4 = arith.constant 4 : index
    %36 = memref.load %arg2[%c0_28, %c4] : memref<4x7xf32, #tpu.memory_space<smem>>
    %37 = vector.broadcast %36 : f32 to vector<64x128xf32>
    %38 = arith.mulf %37, %35 : vector<64x128xf32>
    %39 = arith.addf %34, %38 : vector<64x128xf32>
    %c123_i32 = arith.constant 123 : i32
    %40 = tpu.dynamic_rotate %15 by %c123_i32 dim 1 : vector<64x128xf32>, i32 -> vector<64x128xf32>
    %c0_29 = arith.constant 0 : index
    %c5 = arith.constant 5 : index
    %41 = memref.load %arg2[%c0_29, %c5] : memref<4x7xf32, #tpu.memory_space<smem>>
    %42 = vector.broadcast %41 : f32 to vector<64x128xf32>
    %43 = arith.mulf %42, %40 : vector<64x128xf32>
    %44 = arith.addf %39, %43 : vector<64x128xf32>
    %c122_i32 = arith.constant 122 : i32
    %45 = tpu.dynamic_rotate %15 by %c122_i32 dim 1 : vector<64x128xf32>, i32 -> vector<64x128xf32>
    %c0_30 = arith.constant 0 : index
    %c6 = arith.constant 6 : index
    %46 = memref.load %arg2[%c0_30, %c6] : memref<4x7xf32, #tpu.memory_space<smem>>
    %47 = vector.broadcast %46 : f32 to vector<64x128xf32>
    %48 = arith.mulf %47, %45 : vector<64x128xf32>
    %49 = arith.addf %44, %48 : vector<64x128xf32>
    %c1_31 = arith.constant 1 : index
    %50 = memref.load %arg1[%c1_31] : memref<4xi32, #tpu.memory_space<smem>>
    %c0_i32_32 = arith.constant 0 : i32
    %51 = arith.addi %c0_i32_32, %50 : i32
    %c0_33 = arith.constant 0 : index
    %52 = arith.index_cast %51 : i32 to index
    %c0_34 = arith.constant 0 : index
    %53 = vector.load %arg5[%c0_33, %52, %c0_34] : memref<4x22x128xf32, #tpu.memory_space<vmem>>, vector<4x16x128xf32>
    %54 = vector.shape_cast %53 : vector<4x16x128xf32> to vector<64x128xf32>
    %c1_35 = arith.constant 1 : index
    %c0_36 = arith.constant 0 : index
    %55 = memref.load %arg2[%c1_35, %c0_36] : memref<4x7xf32, #tpu.memory_space<smem>>
    %56 = vector.broadcast %55 : f32 to vector<64x128xf32>
    %57 = arith.mulf %56, %54 : vector<64x128xf32>
    %58 = arith.addf %49, %57 : vector<64x128xf32>
    %c127_i32_37 = arith.constant 127 : i32
    %59 = tpu.dynamic_rotate %54 by %c127_i32_37 dim 1 : vector<64x128xf32>, i32 -> vector<64x128xf32>
    %c1_38 = arith.constant 1 : index
    %c1_39 = arith.constant 1 : index
    %60 = memref.load %arg2[%c1_38, %c1_39] : memref<4x7xf32, #tpu.memory_space<smem>>
    %61 = vector.broadcast %60 : f32 to vector<64x128xf32>
    %62 = arith.mulf %61, %59 : vector<64x128xf32>
    %63 = arith.addf %58, %62 : vector<64x128xf32>
    %c126_i32_40 = arith.constant 126 : i32
    %64 = tpu.dynamic_rotate %54 by %c126_i32_40 dim 1 : vector<64x128xf32>, i32 -> vector<64x128xf32>
    %c1_41 = arith.constant 1 : index
    %c2_42 = arith.constant 2 : index
    %65 = memref.load %arg2[%c1_41, %c2_42] : memref<4x7xf32, #tpu.memory_space<smem>>
    %66 = vector.broadcast %65 : f32 to vector<64x128xf32>
    %67 = arith.mulf %66, %64 : vector<64x128xf32>
    %68 = arith.addf %63, %67 : vector<64x128xf32>
    %c125_i32_43 = arith.constant 125 : i32
    %69 = tpu.dynamic_rotate %54 by %c125_i32_43 dim 1 : vector<64x128xf32>, i32 -> vector<64x128xf32>
    %c1_44 = arith.constant 1 : index
    %c3_45 = arith.constant 3 : index
    %70 = memref.load %arg2[%c1_44, %c3_45] : memref<4x7xf32, #tpu.memory_space<smem>>
    %71 = vector.broadcast %70 : f32 to vector<64x128xf32>
    %72 = arith.mulf %71, %69 : vector<64x128xf32>
    %73 = arith.addf %68, %72 : vector<64x128xf32>
    %c124_i32_46 = arith.constant 124 : i32
    %74 = tpu.dynamic_rotate %54 by %c124_i32_46 dim 1 : vector<64x128xf32>, i32 -> vector<64x128xf32>
    %c1_47 = arith.constant 1 : index
    %c4_48 = arith.constant 4 : index
    %75 = memref.load %arg2[%c1_47, %c4_48] : memref<4x7xf32, #tpu.memory_space<smem>>
    %76 = vector.broadcast %75 : f32 to vector<64x128xf32>
    %77 = arith.mulf %76, %74 : vector<64x128xf32>
    %78 = arith.addf %73, %77 : vector<64x128xf32>
    %c123_i32_49 = arith.constant 123 : i32
    %79 = tpu.dynamic_rotate %54 by %c123_i32_49 dim 1 : vector<64x128xf32>, i32 -> vector<64x128xf32>
    %c1_50 = arith.constant 1 : index
    %c5_51 = arith.constant 5 : index
    %80 = memref.load %arg2[%c1_50, %c5_51] : memref<4x7xf32, #tpu.memory_space<smem>>
    %81 = vector.broadcast %80 : f32 to vector<64x128xf32>
    %82 = arith.mulf %81, %79 : vector<64x128xf32>
    %83 = arith.addf %78, %82 : vector<64x128xf32>
    %c122_i32_52 = arith.constant 122 : i32
    %84 = tpu.dynamic_rotate %54 by %c122_i32_52 dim 1 : vector<64x128xf32>, i32 -> vector<64x128xf32>
    %c1_53 = arith.constant 1 : index
    %c6_54 = arith.constant 6 : index
    %85 = memref.load %arg2[%c1_53, %c6_54] : memref<4x7xf32, #tpu.memory_space<smem>>
    %86 = vector.broadcast %85 : f32 to vector<64x128xf32>
    %87 = arith.mulf %86, %84 : vector<64x128xf32>
    %88 = arith.addf %83, %87 : vector<64x128xf32>
    %c2_55 = arith.constant 2 : index
    %89 = memref.load %arg1[%c2_55] : memref<4xi32, #tpu.memory_space<smem>>
    %c0_i32_56 = arith.constant 0 : i32
    %90 = arith.addi %c0_i32_56, %89 : i32
    %c0_57 = arith.constant 0 : index
    %91 = arith.index_cast %90 : i32 to index
    %c0_58 = arith.constant 0 : index
    %92 = vector.load %arg5[%c0_57, %91, %c0_58] : memref<4x22x128xf32, #tpu.memory_space<vmem>>, vector<4x16x128xf32>
    %93 = vector.shape_cast %92 : vector<4x16x128xf32> to vector<64x128xf32>
    %c2_59 = arith.constant 2 : index
    %c0_60 = arith.constant 0 : index
    %94 = memref.load %arg2[%c2_59, %c0_60] : memref<4x7xf32, #tpu.memory_space<smem>>
    %95 = vector.broadcast %94 : f32 to vector<64x128xf32>
    %96 = arith.mulf %95, %93 : vector<64x128xf32>
    %97 = arith.addf %88, %96 : vector<64x128xf32>
    %c127_i32_61 = arith.constant 127 : i32
    %98 = tpu.dynamic_rotate %93 by %c127_i32_61 dim 1 : vector<64x128xf32>, i32 -> vector<64x128xf32>
    %c2_62 = arith.constant 2 : index
    %c1_63 = arith.constant 1 : index
    %99 = memref.load %arg2[%c2_62, %c1_63] : memref<4x7xf32, #tpu.memory_space<smem>>
    %100 = vector.broadcast %99 : f32 to vector<64x128xf32>
    %101 = arith.mulf %100, %98 : vector<64x128xf32>
    %102 = arith.addf %97, %101 : vector<64x128xf32>
    %c126_i32_64 = arith.constant 126 : i32
    %103 = tpu.dynamic_rotate %93 by %c126_i32_64 dim 1 : vector<64x128xf32>, i32 -> vector<64x128xf32>
    %c2_65 = arith.constant 2 : index
    %c2_66 = arith.constant 2 : index
    %104 = memref.load %arg2[%c2_65, %c2_66] : memref<4x7xf32, #tpu.memory_space<smem>>
    %105 = vector.broadcast %104 : f32 to vector<64x128xf32>
    %106 = arith.mulf %105, %103 : vector<64x128xf32>
    %107 = arith.addf %102, %106 : vector<64x128xf32>
    %c125_i32_67 = arith.constant 125 : i32
    %108 = tpu.dynamic_rotate %93 by %c125_i32_67 dim 1 : vector<64x128xf32>, i32 -> vector<64x128xf32>
    %c2_68 = arith.constant 2 : index
    %c3_69 = arith.constant 3 : index
    %109 = memref.load %arg2[%c2_68, %c3_69] : memref<4x7xf32, #tpu.memory_space<smem>>
    %110 = vector.broadcast %109 : f32 to vector<64x128xf32>
    %111 = arith.mulf %110, %108 : vector<64x128xf32>
    %112 = arith.addf %107, %111 : vector<64x128xf32>
    %c124_i32_70 = arith.constant 124 : i32
    %113 = tpu.dynamic_rotate %93 by %c124_i32_70 dim 1 : vector<64x128xf32>, i32 -> vector<64x128xf32>
    %c2_71 = arith.constant 2 : index
    %c4_72 = arith.constant 4 : index
    %114 = memref.load %arg2[%c2_71, %c4_72] : memref<4x7xf32, #tpu.memory_space<smem>>
    %115 = vector.broadcast %114 : f32 to vector<64x128xf32>
    %116 = arith.mulf %115, %113 : vector<64x128xf32>
    %117 = arith.addf %112, %116 : vector<64x128xf32>
    %c123_i32_73 = arith.constant 123 : i32
    %118 = tpu.dynamic_rotate %93 by %c123_i32_73 dim 1 : vector<64x128xf32>, i32 -> vector<64x128xf32>
    %c2_74 = arith.constant 2 : index
    %c5_75 = arith.constant 5 : index
    %119 = memref.load %arg2[%c2_74, %c5_75] : memref<4x7xf32, #tpu.memory_space<smem>>
    %120 = vector.broadcast %119 : f32 to vector<64x128xf32>
    %121 = arith.mulf %120, %118 : vector<64x128xf32>
    %122 = arith.addf %117, %121 : vector<64x128xf32>
    %c122_i32_76 = arith.constant 122 : i32
    %123 = tpu.dynamic_rotate %93 by %c122_i32_76 dim 1 : vector<64x128xf32>, i32 -> vector<64x128xf32>
    %c2_77 = arith.constant 2 : index
    %c6_78 = arith.constant 6 : index
    %124 = memref.load %arg2[%c2_77, %c6_78] : memref<4x7xf32, #tpu.memory_space<smem>>
    %125 = vector.broadcast %124 : f32 to vector<64x128xf32>
    %126 = arith.mulf %125, %123 : vector<64x128xf32>
    %127 = arith.addf %122, %126 : vector<64x128xf32>
    %c3_79 = arith.constant 3 : index
    %128 = memref.load %arg1[%c3_79] : memref<4xi32, #tpu.memory_space<smem>>
    %c0_i32_80 = arith.constant 0 : i32
    %129 = arith.addi %c0_i32_80, %128 : i32
    %c0_81 = arith.constant 0 : index
    %130 = arith.index_cast %129 : i32 to index
    %c0_82 = arith.constant 0 : index
    %131 = vector.load %arg5[%c0_81, %130, %c0_82] : memref<4x22x128xf32, #tpu.memory_space<vmem>>, vector<4x16x128xf32>
    %132 = vector.shape_cast %131 : vector<4x16x128xf32> to vector<64x128xf32>
    %c3_83 = arith.constant 3 : index
    %c0_84 = arith.constant 0 : index
    %133 = memref.load %arg2[%c3_83, %c0_84] : memref<4x7xf32, #tpu.memory_space<smem>>
    %134 = vector.broadcast %133 : f32 to vector<64x128xf32>
    %135 = arith.mulf %134, %132 : vector<64x128xf32>
    %136 = arith.addf %127, %135 : vector<64x128xf32>
    %c127_i32_85 = arith.constant 127 : i32
    %137 = tpu.dynamic_rotate %132 by %c127_i32_85 dim 1 : vector<64x128xf32>, i32 -> vector<64x128xf32>
    %c3_86 = arith.constant 3 : index
    %c1_87 = arith.constant 1 : index
    %138 = memref.load %arg2[%c3_86, %c1_87] : memref<4x7xf32, #tpu.memory_space<smem>>
    %139 = vector.broadcast %138 : f32 to vector<64x128xf32>
    %140 = arith.mulf %139, %137 : vector<64x128xf32>
    %141 = arith.addf %136, %140 : vector<64x128xf32>
    %c126_i32_88 = arith.constant 126 : i32
    %142 = tpu.dynamic_rotate %132 by %c126_i32_88 dim 1 : vector<64x128xf32>, i32 -> vector<64x128xf32>
    %c3_89 = arith.constant 3 : index
    %c2_90 = arith.constant 2 : index
    %143 = memref.load %arg2[%c3_89, %c2_90] : memref<4x7xf32, #tpu.memory_space<smem>>
    %144 = vector.broadcast %143 : f32 to vector<64x128xf32>
    %145 = arith.mulf %144, %142 : vector<64x128xf32>
    %146 = arith.addf %141, %145 : vector<64x128xf32>
    %c125_i32_91 = arith.constant 125 : i32
    %147 = tpu.dynamic_rotate %132 by %c125_i32_91 dim 1 : vector<64x128xf32>, i32 -> vector<64x128xf32>
    %c3_92 = arith.constant 3 : index
    %c3_93 = arith.constant 3 : index
    %148 = memref.load %arg2[%c3_92, %c3_93] : memref<4x7xf32, #tpu.memory_space<smem>>
    %149 = vector.broadcast %148 : f32 to vector<64x128xf32>
    %150 = arith.mulf %149, %147 : vector<64x128xf32>
    %151 = arith.addf %146, %150 : vector<64x128xf32>
    %c124_i32_94 = arith.constant 124 : i32
    %152 = tpu.dynamic_rotate %132 by %c124_i32_94 dim 1 : vector<64x128xf32>, i32 -> vector<64x128xf32>
    %c3_95 = arith.constant 3 : index
    %c4_96 = arith.constant 4 : index
    %153 = memref.load %arg2[%c3_95, %c4_96] : memref<4x7xf32, #tpu.memory_space<smem>>
    %154 = vector.broadcast %153 : f32 to vector<64x128xf32>
    %155 = arith.mulf %154, %152 : vector<64x128xf32>
    %156 = arith.addf %151, %155 : vector<64x128xf32>
    %c123_i32_97 = arith.constant 123 : i32
    %157 = tpu.dynamic_rotate %132 by %c123_i32_97 dim 1 : vector<64x128xf32>, i32 -> vector<64x128xf32>
    %c3_98 = arith.constant 3 : index
    %c5_99 = arith.constant 5 : index
    %158 = memref.load %arg2[%c3_98, %c5_99] : memref<4x7xf32, #tpu.memory_space<smem>>
    %159 = vector.broadcast %158 : f32 to vector<64x128xf32>
    %160 = arith.mulf %159, %157 : vector<64x128xf32>
    %161 = arith.addf %156, %160 : vector<64x128xf32>
    %c122_i32_100 = arith.constant 122 : i32
    %162 = tpu.dynamic_rotate %132 by %c122_i32_100 dim 1 : vector<64x128xf32>, i32 -> vector<64x128xf32>
    %c3_101 = arith.constant 3 : index
    %c6_102 = arith.constant 6 : index
    %163 = memref.load %arg2[%c3_101, %c6_102] : memref<4x7xf32, #tpu.memory_space<smem>>
    %164 = vector.broadcast %163 : f32 to vector<64x128xf32>
    %165 = arith.mulf %164, %162 : vector<64x128xf32>
    %166 = arith.addf %161, %165 : vector<64x128xf32>
    %167 = vector.extract_strided_slice %166 {offsets = [0, 0], sizes = [64, 16], strides = [1, 1]} : vector<64x128xf32> to vector<64x16xf32>
    %168 = vector.shape_cast %167 : vector<64x16xf32> to vector<4x16x16xf32>
    %c0_103 = arith.constant 0 : index
    %c0_104 = arith.constant 0 : index
    %c0_105 = arith.constant 0 : index
    %169 = vector.load %arg4[%c0_103, %c0_104, %c0_105] : memref<4x16x16xf32, #tpu.memory_space<vmem>>, vector<4x16x16xf32>
    tpu.vector_store %arg4[%c0_103, %c0_104, %c0_105], %168 {strides = array<i32>} : memref<4x16x16xf32, #tpu.memory_space<vmem>>, vector<4x16x16xf32>,
    return
  }
  func.func @transform_0(%arg0: i32) -> i32 {
    %c0_i32 = arith.constant 0 : i32
    %c0_i32_0 = arith.constant 0 : i32
    return %c0_i32 : i32
  }
  func.func @transform_1(%arg0: i32) -> (i32, i32) {
    %c0_i32 = arith.constant 0 : i32
    %c0_i32_0 = arith.constant 0 : i32
    %c0_i32_1 = arith.constant 0 : i32
    return %c0_i32, %c0_i32_0 : i32, i32
  }
  func.func @transform_2(%arg0: i32) -> (i32, i32, i32) {
    %c0_i32 = arith.constant 0 : i32
    %c0_i32_0 = arith.constant 0 : i32
    %c0_i32_1 = arith.constant 0 : i32
    return %arg0, %c0_i32, %c0_i32_0 : i32, i32, i32
  }
  func.func @transform_3(%arg0: i32) -> (i32, i32, i32) {
    %c0_i32 = arith.constant 0 : i32
    %c0_i32_0 = arith.constant 0 : i32
    %c0_i32_1 = arith.constant 0 : i32
    return %arg0, %c0_i32, %c0_i32_0 : i32, i32, i32
  }
}

</mosaic_0001>

<bundles_post_ra>
// kernel: _motion_blur_conv.1
= control target key start
LH: loop header
LB: loop body
LE: loop exit
PB: predicated region body
PF: predicated region fallthrough
CT: control target
= control target key end

     0   :  { %8 = vsyncpa [#allocation6], 0  ;;  %s2917_s0 = inlined_call_operand.hbm [shape: s32[4], index: 0, kind: input, shape index: {}]   ;;  %s2918_s1 = inlined_call_operand.hbm [shape: f32[4,7], index: 1, kind: input, shape index: {}]   ;;  %s2919_s2 = inlined_call_operand.hbm [shape: f32[8,16,16], index: 2, kind: input, shape index: {}]   ;;  %s2920_s3 = inlined_call_operand.hbm [shape: f32[8,16,16], index: 3, kind: output, shape index: {}]  }
   0x1   :  { %9 = vsyncpa [#allocation8], 0 }
   0x2   :  { %10 = vsyncpa [#allocation4], 0 }
   0x3   :  { %12 = vsyncpa [#allocation4 + $0x1], 0 }
   0x4   :  { %13 = vsyncpa [#allocation5], 0 }
   0x5   :  { %15 = vsyncpa [#allocation5 + $0x1], 0  ;;  %s1642_s12 = smov 0   ;;  %s1644_s13 = smov 0  }
   0x6   :  { %s1646_s14 = smov 0   ;;  %s1648_s15 = smov 0  }
   0x7 LB: > { %s1663_s16 = sadd.s32 4294967295, %s1604_s15   ;;  %s1341_s17 = sadd.s32 4294967294, %s1604_s15   ;;  %s1604_s15 = sphi %s1648_s15, %s3068_s15   ;;  %s1600_s14 = sphi %s1646_s14, %s3067_s14   ;;  %s1596_s13 = sphi %s1644_s13, %s3066_s13   ;;  %s1592_s12 = sphi %s1642_s12, %s3065_s12  }
   0x8   : > { %s1667_s18 = sadd.s32 1, %s1604_s15   ;;  %s70_s19 = sadd.s32 1, %s1600_s14 }
   0x9   : > { %s67_s20 = ssub.s32 %s1604_s15, %s1667_s18  ;;  %p77_p0 = scmp.ne.s32.totalorder %s1600_s14, %s1596_s13 }
   0xa   : > { %p68_p1 = scmp.eq.s32.totalorder %s67_s20, 0  ;;  %p78_p2 = scmp.eq.s32.totalorder %s1604_s15, 0 }
   0xb   : > { %p83_p3 = scmp.ne.s32.totalorder %s1596_s13, %s1592_s12  ;;  %p2921_p4 = scmp.eq.s32.totalorder %s1663_s16, 0 }
   0xc   : > { %s1679_s21 = scalar_select %p68_p1, %s1600_s14, %s70_s19  }
   0xd   : > { %p1681_p5 = por %p78_p2, %p77_p0  ;;  %p1687_p6 = por %p2921_p4, %p83_p3 }
   0xe   : > { %p107_p7 = scmp.eq.s32.totalorder %s1663_s16, 1  ;;  %p113_p8 = scmp.eq.s32.totalorder %s1341_s17, 1 }
   0xf   : > { %s2928_s22 = scalar_select %p1681_p5, 1, 0 }
  0x10   : > { %s2929_s23 = scalar_select %p1687_p6, 1, 0 }
  0x11   : > { %p1342_p9 = scmp.ge.s32.totalorder %s1604_s15, 1  ;;  %p120_p10 = scmp.lt.s32.totalorder %s1604_s15, 3 }
  0x12   : > { %p1694_p11 = por %p107_p7, %p77_p0  ;;  %p1698_p12 = por %p113_p8, %p83_p3 }
  0x13   : > { %p1702_p13 = pnand %p1342_p9, %p120_p10  ;;  %p1424_p4 = scmp.lt.s32.totalorder %s1604_s15, 2 }
  0x14   : > { %s2930_s24 = scalar_select %p1694_p11, 1, 0 }
  0x15   : > { %s2931_s25 = scalar_select %p1698_p12, 1, 0 }
  0x16   : > { %p1407_p2 = pneg %p1702_p13  ;;  %s151_s27 = sand.u32 1, %s1600_s14  }
  0x17   : > { %p2933_p6 = scmp.eq.s32.totalorder %s1663_s16, 0  ;;  %p2935_p0 = scmp.ne.s32.totalorder %s2928_s22, 0 }
  0x18   : > { %s1346_s30 = sshll.u32 %s151_s27, 6  ;;  %s1474_s6 = scalar_lea.hbm %s2917_s0, 16 }
  0x19   : > { %p1713_p5 = pnand %p1407_p2, %p2933_p6  ;;  %p1719_p3 = pnand %p1424_p4, %p2935_p0 }
  0x1a   : > { %p1475_p7 = scmp.ne.s32.totalorder %s2917_s0, %s1474_s6  ;;  %p1481_p4 = scmp.lt.u32.totalorder %s1474_s6, %s2917_s0 }
  0x1b   : > { %p1476_p6 = pneg %p1713_p5 }
  0x1d   : > { %p1477_p8 = pnand %p1476_p6, %p1475_p7 }
  0x1f   : > { %p1478_p9 = pneg %p1477_p8 }
  0x21   : > { %p1483_p10 = pnand %p1481_p4, %p1478_p9 }
  0x23   : > { %1486 = shalt.err (!%p1483_p10)
}
  0x24   : > { %s1606_s11 = smov [#allocation3]   ;;  %s1487_s4 = scalar_lea.hbm %s2918_s1, 64 }
  0x25   : > { %1410 = dma.hbm_to_smem (!%p1713_p5), %s2917_s0, 16, %s1606_s11, [#allocation6]  }
  0x26   : > { %p1488_p2 = scmp.ne.s32.totalorder %s2918_s1, %s1487_s4  ;;  %p1494_p8 = scmp.lt.u32.totalorder %s1487_s4, %s2918_s1 }
  0x28   : > { %p1490_p0 = pnand %p1488_p2, %p1476_p6 }
  0x2a   : > { %p1491_p7 = pneg %p1490_p0 }
  0x2c   : > { %p1496_p9 = pnand %p1494_p8, %p1491_p7 }
  0x2e   : > { %1499 = shalt.err (!%p1496_p9)
}
  0x2f   : > { %s1607_s9 = smov [#allocation7]   ;;  %s1392_s17 = sshll.u32 %s1604_s15, 10 }
  0x30   : > { %1413 = dma.hbm_to_smem (!%p1713_p5), %s2918_s1, 64, %s1607_s9, [#allocation8]  }
  0x31   : > { %s1757_s22 = scalar_lea.hbm %s2919_s2, %s1392_s17  ;;  %s155_s4 = scalar_lea.vmem [#allocation9], %s1346_s30 }
  0x32   : > { %s163_s5 = sshll.u32 %s155_s4, 4  ;;  %s1761_s28 = scalar_lea.sflag [#allocation4], %s151_s27  ;;  %s1759_s5 = int_to_ptr.vmem [resolvable:$true] %s163_s5 }
  0x33   : > { %s1500_s7 = scalar_lea.hbm %s1757_s22, 1024  ;;  %p1502_p5 = pneg %p1719_p3 }
  0x34   : > { %p1501_p6 = scmp.ne.s32.totalorder %s1757_s22, %s1500_s7  ;;  %s1505_s9 = scalar_lea.hbm %s2919_s2, 2048 }
  0x35   : > { %p1506_p2 = scmp.lt.u32.totalorder %s1757_s22, %s2919_s2  ;;  %p1507_p0 = scmp.lt.u32.totalorder %s1505_s9, %s1500_s7 }
  0x36   : > { %p1503_p4 = pnand %p1502_p5, %p1501_p6  ;;  %p1509_p8 = scmp.lt.u32.totalorder %s1500_s7, %s1757_s22 }
  0x37   : > { %p1508_p7 = por %p1507_p0, %p1506_p2 }
  0x38   : > { %p1504_p10 = pneg %p1503_p4 }
  0x39   : > { %p1510_p9 = por %p1509_p8, %p1508_p7 }
  0x3b   : > { %p1511_p1 = pnand %p1510_p9, %p1504_p10 }
  0x3d   : > { %1514 = shalt.err (!%p1511_p1)
}
  0x3e   : > { %s1515_s27 = scalar_lea.vmem %s1759_s5, 1024  ;;  %s1608_s30 = smov [#allocation9]  }
  0x3f   : > { %p1516_p6 = scmp.ne.s32.totalorder %s1759_s5, %s1515_s27  ;;  %s1520_s17 = sshll.u32 %s1608_s30, 4  ;;  %s1521_s17 = int_to_ptr.vmem [resolvable:$false] %s1520_s17 }
  0x40   : > { %s1522_s19 = scalar_lea.vmem %s1521_s17, 2048  ;;  %p1523_p11 = scmp.lt.s32.totalorder %s1759_s5, %s1521_s17 }
  0x41   : > { %p1518_p4 = pnand %p1516_p6, %p1502_p5  ;;  %p1524_p2 = scmp.lt.s32.totalorder %s1522_s19, %s1515_s27 }
  0x43   : > { %p1519_p12 = pneg %p1518_p4  ;;  %p1525_p0 = por %p1524_p2, %p1523_p11 }
  0x45   : > { %p1526_p7 = pnand %p1525_p0, %p1519_p12 }
  0x47   : > { %1529 = shalt.err (!%p1526_p7)
}
  0x48   : > { %s1609_s20 = smov 128   ;;  %s1610_s4 = smov 8  }
  0x49   : > { %1417 = dma.hbm_to_vmem [thread:$0]  (!%p1719_p3), %s1757_s22, 1024, %s1759_s5, %s1761_s28, %s1609_s20, %s1609_s20, %s1610_s4  }
  0x4a   : > { %175 = sbr.rel (%p1702_p13) target bundleno = 743 (0x2e7), region = 32 }
  0x51   : > { %p2937_p1 = scmp.eq.s32.totalorder %s1663_s16, 0 }
  0x53   : > { %1575 = dma.done.wait (%p2937_p1), [#allocation6], 16   ;;  %p2938_p5 = pmov %p2937_p1 }
  0x54   : > { %p2939_p11 = pmov %p2937_p1 }
  0x55   : > { %1577 = vsyncadd (%p2938_p5), [#allocation6], 4294967280 }
  0x56   : > { %1579 = dma.done.wait (%p2939_p11), [#allocation8], 64   ;;  %p2940_p12 = pmov %p2937_p1 }
  0x57   : > { %s1800_s7 = sand.u32 1, %s1596_s13   ;;  %p2941_p13 = scmp.ne.s32.totalorder %s2929_s23, 0 }
  0x58   : > { %1581 = vsyncadd (%p2940_p12), [#allocation8], 4294967232  ;;  %s1353_s26 = sshll.u32 %s1800_s7, 6  ;;  %s186_s29 = scalar_lea.sflag [#allocation4], %s1800_s7 }
  0x59   : > { %s1806_s22 = scalar_lea.vmem [#allocation9], %s1353_s26 }
  0x5a   : > { %1583 = dma.done.wait (%p2941_p13), %s186_s29, 1024  }
  0x5b   : > { %1585 = vsyncadd (%p2941_p13), %s186_s29, 4294966272 }
  0x5c   : > { %194 = sfence }
  0x5d   : > { %v243_v0 = vld [vmem:[%s1806_s22 + $0x10] sm:$0xff]  ;;  %v241_v1 = vld [vmem:[%s1806_s22] sm:$0xff]  ;;  %s1611_s5 = smov 3   ;;  %vm223_vm0 = vcmask 23552   ;;  %vm232_vm1 = vcmask 1047704   ;;  %v1612_v2 = vmov 0.0  }
  0x5e   : > { %261 = vrot.lane.b32.xlu1 %v243_v0, %s1611_s5  ;;  %257 = vrot.lane.b32.xlu0 %v241_v1, %s1611_s5  ;;  %215 = vst [vmem:[#allocation2] sm:$0x7] %v1612_v2  ;;  %216 = vst [vmem:[#allocation2 + $0x18] sm:$0x7] %v1612_v2  ;;  %v244_v3 = vld [vmem:[%s1806_s22 + $0x18] sm:$0xff]  ;;  %v242_v4 = vld [vmem:[%s1806_s22 + $0x8] sm:$0xff] }
  0x5f   : > { %217 = vst [vmem:[#allocation2 + $0x30] sm:$0x7] %v1612_v2  ;;  %218 = vst [vmem:[#allocation2 + $0x48] sm:$0x7] %v1612_v2  ;;  %v246_v5 = vld [vmem:[%s1806_s22 + $0x28] sm:$0xff]  ;;  %v245_v6 = vld [vmem:[%s1806_s22 + $0x20] sm:$0xff] }
  0x60   : > { %219 = vst [vmem:[#allocation2 + $0x13] sm:$0x7] %v1612_v2  ;;  %220 = vst [vmem:[#allocation2 + $0x2b] sm:$0x7] %v1612_v2  ;;  %v248_v7 = vld [vmem:[%s1806_s22 + $0x38] sm:$0xff]  ;;  %v247_v8 = vld [vmem:[%s1806_s22 + $0x30] sm:$0xff] }
  0x61   : > { %221 = vst [vmem:[#allocation2 + $0x43] sm:$0x7] %v1612_v2  ;;  %222 = vst [vmem:[#allocation2 + $0x5b] sm:$0x7] %v1612_v2  ;;  %vm281_vm2 = vcmask 154648   ;;  %s290_s23 = sld [smem:[#allocation3]] }
  0x62   : > { %226 = vst.msk [vmem:[#allocation2 + $0x1b] sm:$0xff] %vm223_vm0, %v1612_v2  ;;  %224 = vst.msk [vmem:[#allocation2 + $0x3] sm:$0xff] %vm223_vm0, %v1612_v2  ;;  %263 = vrot.lane.b32.xlu1 %v244_v3, %s1611_s5  ;;  %259 = vrot.lane.b32.xlu0 %v242_v4, %s1611_s5  ;;  %s1613_s6 = smov 127   ;;  %s1614_s8 = smov 126   ;;  %vm1218_vm3 = vcmask 130048  }
  0x63   : > { %225 = vst.msk [vmem:[#allocation2 + $0xb] sm:$0xff] %vm223_vm0, %v1612_v2  ;;  %227 = vst.msk [vmem:[#allocation2 + $0x23] sm:$0xff] %vm223_vm0, %v1612_v2  ;;  %s1615_s9 = smov 125   ;;  %s1616_s10 = smov 124  }
  0x64   : > { %228 = vst.msk [vmem:[#allocation2 + $0x33] sm:$0xff] %vm223_vm0, %v1612_v2  ;;  %229 = vst.msk [vmem:[#allocation2 + $0x3b] sm:$0xff] %vm223_vm0, %v1612_v2  ;;  %s1617_s11 = smov 123   ;;  %s1618_s27 = smov 122  }
  0x65   : > { %230 = vst.msk [vmem:[#allocation2 + $0x4b] sm:$0xff] %vm223_vm0, %v1612_v2  ;;  %231 = vst.msk [vmem:[#allocation2 + $0x53] sm:$0xff] %vm223_vm0, %v1612_v2  ;;  %s1361_s30 = sld [smem:[#allocation3 + $0x1]]  ;;  %s1369_s19 = sld [smem:[#allocation3 + $0x2]] }
  0x66   : > { %235 = vst.msk [vmem:[#allocation2 + $0x1b] sm:$0xff] %vm232_vm1, %v1612_v2  ;;  %233 = vst.msk [vmem:[#allocation2 + $0x3] sm:$0xff] %vm232_vm1, %v1612_v2  ;;  %267 = vrot.lane.b32.xlu1 %v246_v5, %s1611_s5  ;;  %265 = vrot.lane.b32.xlu0 %v245_v6, %s1611_s5  ;;  %s300_s4 = sld [smem:[#allocation7]]  ;;  %s1355_s22 = sld [smem:[#allocation7 + $0x1]] }
  0x67   : > { %234 = vst.msk [vmem:[#allocation2 + $0xb] sm:$0xff] %vm232_vm1, %v1612_v2  ;;  %236 = vst.msk [vmem:[#allocation2 + $0x23] sm:$0xff] %vm232_vm1, %v1612_v2  ;;  %s291_s28 = scalar_lea.vmem [#allocation2], %s290_s23  ;;  %s1362_s29 = sld [smem:[#allocation7 + $0x80]] }
  0x68   : > { %237 = vst.msk [vmem:[#allocation2 + $0x33] sm:$0xff] %vm232_vm1, %v1612_v2  ;;  %238 = vst.msk [vmem:[#allocation2 + $0x3b] sm:$0xff] %vm232_vm1, %v1612_v2  ;;  %s2304_s23 = sld [smem:[#allocation7 + $0x2]]  ;;  %p3062_p10 = scmp.ne.s32.totalorder %s2930_s24, 0 }
  0x69   : > { %239 = vst.msk [vmem:[#allocation2 + $0x4b] sm:$0xff] %vm232_vm1, %v1612_v2  ;;  %240 = vst.msk [vmem:[#allocation2 + $0x53] sm:$0xff] %vm232_vm1, %v1612_v2 }
  0x6a   : > { %271 = vrot.lane.b32.xlu1 %v248_v7, %s1611_s5  ;;  %269 = vrot.lane.b32.xlu0 %v247_v8, %s1611_s5  ;;  %s1370_s5 = sld [smem:[#allocation7 + $0x100]] }
  0x6b   : > { %s523_s17 = scalar_lea.vmem [#allocation2], %s1361_s30  ;;  %s755_s20 = scalar_lea.vmem [#allocation2], %s1369_s19 }
  0x6c   : > { %s2347_s30 = sld [smem:[#allocation7 + $0x4]]  ;;  %s2414_s19 = sld [smem:[#allocation7 + $0x6]] }
  0xd0   : > { %v262_v9 = vpop.permute.xlu1 %261  ;;  %v258_v10 = vpop.permute.xlu0 %257 }
  0xd1   : > { %284 = vst.msk [vmem:[#allocation2 + $0x1b] sm:$0xff] %vm281_vm2, %v262_v9  ;;  %282 = vst.msk [vmem:[#allocation2 + $0x3] sm:$0xff] %vm281_vm2, %v258_v10 }
  0xd4   : > { %v264_v11 = vpop.permute.xlu1 %263  ;;  %v260_v12 = vpop.permute.xlu0 %259 }
  0xd5   : > { %285 = vst.msk [vmem:[#allocation2 + $0x23] sm:$0xff] %vm281_vm2, %v264_v11  ;;  %283 = vst.msk [vmem:[#allocation2 + $0xb] sm:$0xff] %vm281_vm2, %v260_v12 }
  0xd8   : > { %v268_v13 = vpop.permute.xlu1 %267  ;;  %v266_v14 = vpop.permute.xlu0 %265 }
  0xd9   : > { %287 = vst.msk [vmem:[#allocation2 + $0x3b] sm:$0xff] %vm281_vm2, %v268_v13  ;;  %286 = vst.msk [vmem:[#allocation2 + $0x33] sm:$0xff] %vm281_vm2, %v266_v14 }
  0xdc   : > { %v272_v15 = vpop.permute.xlu1 %271  ;;  %v270_v16 = vpop.permute.xlu0 %269 }
  0xdd   : > { %289 = vst.msk [vmem:[#allocation2 + $0x53] sm:$0xff] %vm281_vm2, %v272_v15  ;;  %288 = vst.msk [vmem:[#allocation2 + $0x4b] sm:$0xff] %vm281_vm2, %v270_v16 }
  0xe4   : > { %v1852_v17 = vld [vmem:[%s291_s28 + $0x8] sm:$0xff]  ;;  %v1854_v18 = vld [vmem:[%s291_s28] sm:$0xff]  ;;  %v1862_v20 = vld [vmem:[%s291_s28 + $0x18] sm:$0xff] }
  0xe5   : > { %320 = vrot.lane.b32.xlu1 %v1852_v17, %s1613_s6  ;;  %318 = vrot.lane.b32.xlu0 %v1854_v18, %s1613_s6  ;;  %v1860_v19 = vld [vmem:[%s291_s28 + $0x20] sm:$0xff]  ;;  %v1868_v21 = vld [vmem:[%s291_s28 + $0x38] sm:$0xff] }
  0xe6   : > { %v1870_v22 = vld [vmem:[%s291_s28 + $0x30] sm:$0xff]  ;;  %v1878_v24 = vld [vmem:[%s291_s28 + $0x48] sm:$0xff]  ;;  %v1966_v26 = vld [vmem:[%s523_s17] sm:$0xff] }
  0xe7   : > { %v1876_v23 = vld [vmem:[%s291_s28 + $0x50] sm:$0xff]  ;;  %v1964_v25 = vld [vmem:[%s523_s17 + $0x8] sm:$0xff]  ;;  %v1972_v27 = vld [vmem:[%s523_s17 + $0x20] sm:$0xff]  ;;  %s2312_s28 = sld [smem:[#allocation7 + $0x3]] }
  0xe8   : > { %v1974_v28 = vld [vmem:[%s523_s17 + $0x18] sm:$0xff]  ;;  %v1982_v30 = vld [vmem:[%s523_s17 + $0x30] sm:$0xff]  ;;  %v1990_v32 = vld [vmem:[%s523_s17 + $0x48] sm:$0xff] }
  0xe9   : > { %324 = vrot.lane.b32.xlu1 %v1860_v19, %s1613_s6  ;;  %322 = vrot.lane.b32.xlu0 %v1862_v20, %s1613_s6  ;;  %v1980_v29 = vld [vmem:[%s523_s17 + $0x38] sm:$0xff]  ;;  %v1988_v31 = vld [vmem:[%s523_s17 + $0x50] sm:$0xff]  ;;  %s2394_s17 = sld [smem:[#allocation7 + $0x5]] }
  0xea   : > { %v2156_v9 = vld [vmem:[%s755_s20 + $0x8] sm:$0xff]  ;;  %v2158_v10 = vld [vmem:[%s755_s20] sm:$0xff]  ;;  %v2170_v14 = vld [vmem:[%s755_s20 + $0x18] sm:$0xff] }
  0xeb   : > { %v2168_v13 = vld [vmem:[%s755_s20 + $0x20] sm:$0xff] }
  0xed   : > { %328 = vrot.lane.b32.xlu1 %v1868_v21, %s1613_s6  ;;  %326 = vrot.lane.b32.xlu0 %v1870_v22, %s1613_s6 }
  0xf1   : > { %332 = vrot.lane.b32.xlu1 %v1876_v23, %s1613_s6  ;;  %330 = vrot.lane.b32.xlu0 %v1878_v24, %s1613_s6 }
  0xf5   : > { %354 = vrot.lane.b32.xlu1 %v1852_v17, %s1614_s8  ;;  %352 = vrot.lane.b32.xlu0 %v1854_v18, %s1614_s8 }
  0xf9   : > { %358 = vrot.lane.b32.xlu1 %v1860_v19, %s1614_s8  ;;  %356 = vrot.lane.b32.xlu0 %v1862_v20, %s1614_s8 }
  0xfd   : > { %362 = vrot.lane.b32.xlu1 %v1868_v21, %s1614_s8  ;;  %360 = vrot.lane.b32.xlu0 %v1870_v22, %s1614_s8 }
 0x101   : > { %366 = vrot.lane.b32.xlu1 %v1876_v23, %s1614_s8  ;;  %364 = vrot.lane.b32.xlu0 %v1878_v24, %s1614_s8 }
 0x105   : > { %388 = vrot.lane.b32.xlu1 %v1852_v17, %s1615_s9  ;;  %386 = vrot.lane.b32.xlu0 %v1854_v18, %s1615_s9 }
 0x109   : > { %392 = vrot.lane.b32.xlu1 %v1860_v19, %s1615_s9  ;;  %390 = vrot.lane.b32.xlu0 %v1862_v20, %s1615_s9 }
 0x10d   : > { %396 = vrot.lane.b32.xlu1 %v1868_v21, %s1615_s9  ;;  %394 = vrot.lane.b32.xlu0 %v1870_v22, %s1615_s9 }
 0x111   : > { %400 = vrot.lane.b32.xlu1 %v1876_v23, %s1615_s9  ;;  %398 = vrot.lane.b32.xlu0 %v1878_v24, %s1615_s9 }
 0x115   : > { %422 = vrot.lane.b32.xlu1 %v1852_v17, %s1616_s10  ;;  %420 = vrot.lane.b32.xlu0 %v1854_v18, %s1616_s10 }
 0x119   : > { %426 = vrot.lane.b32.xlu1 %v1860_v19, %s1616_s10  ;;  %424 = vrot.lane.b32.xlu0 %v1862_v20, %s1616_s10 }
 0x11d   : > { %430 = vrot.lane.b32.xlu1 %v1868_v21, %s1616_s10  ;;  %428 = vrot.lane.b32.xlu0 %v1870_v22, %s1616_s10 }
 0x121   : > { %434 = vrot.lane.b32.xlu1 %v1876_v23, %s1616_s10  ;;  %432 = vrot.lane.b32.xlu0 %v1878_v24, %s1616_s10 }
 0x125   : > { %456 = vrot.lane.b32.xlu1 %v1852_v17, %s1617_s11  ;;  %454 = vrot.lane.b32.xlu0 %v1854_v18, %s1617_s11 }
 0x129   : > { %460 = vrot.lane.b32.xlu1 %v1860_v19, %s1617_s11  ;;  %458 = vrot.lane.b32.xlu0 %v1862_v20, %s1617_s11 }
 0x12d   : > { %464 = vrot.lane.b32.xlu1 %v1868_v21, %s1617_s11  ;;  %462 = vrot.lane.b32.xlu0 %v1870_v22, %s1617_s11 }
 0x131   : > { %468 = vrot.lane.b32.xlu1 %v1876_v23, %s1617_s11  ;;  %466 = vrot.lane.b32.xlu0 %v1878_v24, %s1617_s11 }
 0x135   : > { %490 = vrot.lane.b32.xlu1 %v1852_v17, %s1618_s27  ;;  %488 = vrot.lane.b32.xlu0 %v1854_v18, %s1618_s27 }
 0x139   : > { %494 = vrot.lane.b32.xlu1 %v1860_v19, %s1618_s27  ;;  %492 = vrot.lane.b32.xlu0 %v1862_v20, %s1618_s27 }
 0x13d   : > { %498 = vrot.lane.b32.xlu1 %v1868_v21, %s1618_s27  ;;  %496 = vrot.lane.b32.xlu0 %v1870_v22, %s1618_s27 }
 0x141   : > { %502 = vrot.lane.b32.xlu1 %v1876_v23, %s1618_s27  ;;  %500 = vrot.lane.b32.xlu0 %v1878_v24, %s1618_s27 }
 0x145   : > { %552 = vrot.lane.b32.xlu1 %v1964_v25, %s1613_s6  ;;  %550 = vrot.lane.b32.xlu0 %v1966_v26, %s1613_s6 }
 0x149   : > { %556 = vrot.lane.b32.xlu1 %v1972_v27, %s1613_s6  ;;  %554 = vrot.lane.b32.xlu0 %v1974_v28, %s1613_s6 }
 0x14d   : > { %560 = vrot.lane.b32.xlu1 %v1980_v29, %s1613_s6  ;;  %558 = vrot.lane.b32.xlu0 %v1982_v30, %s1613_s6 }
 0x151   : > { %564 = vrot.lane.b32.xlu1 %v1988_v31, %s1613_s6  ;;  %562 = vrot.lane.b32.xlu0 %v1990_v32, %s1613_s6 }
 0x155   : > { %586 = vrot.lane.b32.xlu1 %v1964_v25, %s1614_s8  ;;  %584 = vrot.lane.b32.xlu0 %v1966_v26, %s1614_s8 }
 0x157   : > { %v2000_v33 = vpop.permute.xlu1 %320  ;;  %v2002_v34 = vpop.permute.xlu0 %318 }
 0x159   : > { %590 = vrot.lane.b32.xlu1 %v1972_v27, %s1614_s8  ;;  %588 = vrot.lane.b32.xlu0 %v1974_v28, %s1614_s8 }
 0x15b   : > { %v2008_v35 = vpop.permute.xlu1 %324  ;;  %v2010_v36 = vpop.permute.xlu0 %322 }
 0x15d   : > { %594 = vrot.lane.b32.xlu1 %v1980_v29, %s1614_s8  ;;  %592 = vrot.lane.b32.xlu0 %v1982_v30, %s1614_s8 }
 0x15f   : > { %v2016_v37 = vpop.permute.xlu1 %328  ;;  %v2018_v38 = vpop.permute.xlu0 %326 }
 0x161   : > { %598 = vrot.lane.b32.xlu1 %v1988_v31, %s1614_s8  ;;  %596 = vrot.lane.b32.xlu0 %v1990_v32, %s1614_s8 }
 0x163   : > { %v2024_v39 = vpop.permute.xlu1 %332  ;;  %v2026_v40 = vpop.permute.xlu0 %330 }
 0x165   : > { %620 = vrot.lane.b32.xlu1 %v1964_v25, %s1615_s9  ;;  %618 = vrot.lane.b32.xlu0 %v1966_v26, %s1615_s9 }
 0x167   : > { %v2032_v41 = vpop.permute.xlu1 %354  ;;  %v2034_v42 = vpop.permute.xlu0 %352 }
 0x169   : > { %624 = vrot.lane.b32.xlu1 %v1972_v27, %s1615_s9  ;;  %622 = vrot.lane.b32.xlu0 %v1974_v28, %s1615_s9 }
 0x16b   : > { %v2040_v43 = vpop.permute.xlu1 %358  ;;  %v2042_v44 = vpop.permute.xlu0 %356 }
 0x16d   : > { %628 = vrot.lane.b32.xlu1 %v1980_v29, %s1615_s9  ;;  %626 = vrot.lane.b32.xlu0 %v1982_v30, %s1615_s9 }
 0x16f   : > { %v2048_v45 = vpop.permute.xlu1 %362  ;;  %v2050_v46 = vpop.permute.xlu0 %360 }
 0x171   : > { %632 = vrot.lane.b32.xlu1 %v1988_v31, %s1615_s9  ;;  %630 = vrot.lane.b32.xlu0 %v1990_v32, %s1615_s9 }
 0x173   : > { %v2056_v47 = vpop.permute.xlu1 %366  ;;  %v2058_v48 = vpop.permute.xlu0 %364 }
 0x175   : > { %654 = vrot.lane.b32.xlu1 %v1964_v25, %s1616_s10  ;;  %652 = vrot.lane.b32.xlu0 %v1966_v26, %s1616_s10 }
 0x177   : > { %v2064_v49 = vpop.permute.xlu1 %388  ;;  %v2066_v50 = vpop.permute.xlu0 %386 }
 0x179   : > { %658 = vrot.lane.b32.xlu1 %v1972_v27, %s1616_s10  ;;  %656 = vrot.lane.b32.xlu0 %v1974_v28, %s1616_s10 }
 0x17b   : > { %v2072_v51 = vpop.permute.xlu1 %392  ;;  %v2074_v52 = vpop.permute.xlu0 %390 }
 0x17d   : > { %662 = vrot.lane.b32.xlu1 %v1980_v29, %s1616_s10  ;;  %660 = vrot.lane.b32.xlu0 %v1982_v30, %s1616_s10 }
 0x17f   : > { %v2080_v53 = vpop.permute.xlu1 %396  ;;  %v2082_v54 = vpop.permute.xlu0 %394 }
 0x181   : > { %666 = vrot.lane.b32.xlu1 %v1988_v31, %s1616_s10  ;;  %664 = vrot.lane.b32.xlu0 %v1990_v32, %s1616_s10 }
 0x183   : > { %v2088_v55 = vpop.permute.xlu1 %400  ;;  %v2090_v56 = vpop.permute.xlu0 %398 }
 0x185   : > { %688 = vrot.lane.b32.xlu1 %v1964_v25, %s1617_s11  ;;  %686 = vrot.lane.b32.xlu0 %v1966_v26, %s1617_s11 }
 0x187   : > { %v2096_v57 = vpop.permute.xlu1 %422  ;;  %v2098_v58 = vpop.permute.xlu0 %420 }
 0x189   : > { %692 = vrot.lane.b32.xlu1 %v1972_v27, %s1617_s11  ;;  %690 = vrot.lane.b32.xlu0 %v1974_v28, %s1617_s11 }
 0x18b   : > { %v2104_v59 = vpop.permute.xlu1 %426  ;;  %v2106_v60 = vpop.permute.xlu0 %424 }
 0x18c   : > { %2942 = vst [vmem:[#allocation15_spill] sm:$0xff] %v2104_v59  ;;  %2943 = vst [vmem:[#allocation16_spill] sm:$0xff] %v2106_v60 }
 0x18d   : > { %696 = vrot.lane.b32.xlu1 %v1980_v29, %s1617_s11  ;;  %694 = vrot.lane.b32.xlu0 %v1982_v30, %s1617_s11 }
 0x18f   : > { %v2112_v61 = vpop.permute.xlu1 %430  ;;  %v2114_v62 = vpop.permute.xlu0 %428 }
 0x190   : > { %2944 = vst [vmem:[#allocation17_spill] sm:$0xff] %v2112_v61  ;;  %2945 = vst [vmem:[#allocation18_spill] sm:$0xff] %v2114_v62 }
 0x191   : > { %700 = vrot.lane.b32.xlu1 %v1988_v31, %s1617_s11  ;;  %698 = vrot.lane.b32.xlu0 %v1990_v32, %s1617_s11 }
 0x193   : > { %v2120_v63 = vpop.permute.xlu1 %434  ;;  %v2122_v0 = vpop.permute.xlu0 %432 }
 0x194   : > { %2946 = vst [vmem:[#allocation19_spill] sm:$0xff] %v2120_v63  ;;  %2947 = vst [vmem:[#allocation20_spill] sm:$0xff] %v2122_v0 }
 0x195   : > { %722 = vrot.lane.b32.xlu1 %v1964_v25, %s1618_s27  ;;  %720 = vrot.lane.b32.xlu0 %v1966_v26, %s1618_s27 }
 0x197   : > { %v2128_v1 = vpop.permute.xlu1 %456  ;;  %v2130_v2 = vpop.permute.xlu0 %454 }
 0x198   : > { %2948 = vst [vmem:[#allocation21_spill] sm:$0xff] %v2128_v1  ;;  %2949 = vst [vmem:[#allocation22_spill] sm:$0xff] %v2130_v2  ;;  %v335_v2 = vstv %s1355_s22  ;;  %s2469_s22 = sld [smem:[#allocation7 + $0x83]] }
 0x199   : > { %726 = vrot.lane.b32.xlu1 %v1972_v27, %s1618_s27  ;;  %724 = vrot.lane.b32.xlu0 %v1974_v28, %s1618_s27 }
 0x19b   : > { %v2136_v3 = vpop.permute.xlu1 %460  ;;  %v2138_v4 = vpop.permute.xlu0 %458 }
 0x19c   : > { %2950 = vst [vmem:[#allocation23_spill] sm:$0xff] %v2136_v3  ;;  %2951 = vst [vmem:[#allocation24_spill] sm:$0xff] %v2138_v4  ;;  %v533_v3 = vstv %s1362_s29  ;;  %s2465_s29 = sld [smem:[#allocation7 + $0x82]] }
 0x19d   : > { %730 = vrot.lane.b32.xlu1 %v1980_v29, %s1618_s27  ;;  %728 = vrot.lane.b32.xlu0 %v1982_v30, %s1618_s27  ;;  %v2327_v62 = vmul.f32 %v533_v3, %v1964_v25  ;;  %v2330_v61 = vmul.f32 %v533_v3, %v1966_v26  ;;  %v2353_v25 = vmul.f32 %v533_v3, %v1988_v31 }
 0x19e   : > { %v339_v26 = vmul.f32 %v335_v2, %v2008_v35 }
 0x19f   : > { %v2144_v5 = vpop.permute.xlu1 %464  ;;  %v2146_v6 = vpop.permute.xlu0 %462 }
 0x1a0   : > { %2952 = vst [vmem:[#allocation25_spill] sm:$0xff] %v2144_v5  ;;  %2953 = vst [vmem:[#allocation26_spill] sm:$0xff] %v2146_v6 }
 0x1a1   : > { %734 = vrot.lane.b32.xlu1 %v1988_v31, %s1618_s27  ;;  %732 = vrot.lane.b32.xlu0 %v1990_v32, %s1618_s27  ;;  %v341_v31 = vmul.f32 %v335_v2, %v2016_v37 }
 0x1a3   : > { %v2152_v7 = vpop.permute.xlu1 %468  ;;  %v2154_v8 = vpop.permute.xlu0 %466 }
 0x1a4   : > { %2954 = vst [vmem:[#allocation27_spill] sm:$0xff] %v2152_v7  ;;  %2955 = vst [vmem:[#allocation28_spill] sm:$0xff] %v2154_v8  ;;  %v2180_v8 = vld [vmem:[%s755_s20 + $0x38] sm:$0xff]  ;;  %v2182_v7 = vld [vmem:[%s755_s20 + $0x30] sm:$0xff] }
 0x1a5   : > { %784 = vrot.lane.b32.xlu1 %v2156_v9, %s1613_s6  ;;  %782 = vrot.lane.b32.xlu0 %v2158_v10, %s1613_s6  ;;  %2960 = vst [vmem:[#allocation33_spill] sm:$0xff] %v2180_v8  ;;  %2961 = vst [vmem:[#allocation34_spill] sm:$0xff] %v2182_v7 }
 0x1a7   : > { %v2164_v11 = vpop.permute.xlu1 %490  ;;  %v2166_v12 = vpop.permute.xlu0 %488 }
 0x1a8   : > { %2956 = vst [vmem:[#allocation29_spill] sm:$0xff] %v2164_v11  ;;  %2957 = vst [vmem:[#allocation30_spill] sm:$0xff] %v2166_v12  ;;  %v2192_v12 = vld [vmem:[%s755_s20 + $0x50] sm:$0xff]  ;;  %v2194_v11 = vld [vmem:[%s755_s20 + $0x48] sm:$0xff]  ;;  %s2435_s20 = sld [smem:[#allocation3 + $0x3]] }
 0x1a9   : > { %788 = vrot.lane.b32.xlu1 %v2168_v13, %s1613_s6  ;;  %786 = vrot.lane.b32.xlu0 %v2170_v14, %s1613_s6 }
 0x1ab   : > { %v2176_v15 = vpop.permute.xlu1 %494  ;;  %v2178_v16 = vpop.permute.xlu0 %492 }
 0x1ac   : > { %2958 = vst [vmem:[#allocation31_spill] sm:$0xff] %v2176_v15  ;;  %2959 = vst [vmem:[#allocation32_spill] sm:$0xff] %v2178_v16 }
 0x1ad   : > { %792 = vrot.lane.b32.xlu1 %v2180_v8, %s1613_s6  ;;  %790 = vrot.lane.b32.xlu0 %v2182_v7, %s1613_s6 }
 0x1af   : > { %v2188_v6 = vpop.permute.xlu1 %498  ;;  %v2190_v5 = vpop.permute.xlu0 %496 }
 0x1b0   : > { %2962 = vst [vmem:[#allocation35_spill] sm:$0xff] %v2188_v6  ;;  %2963 = vst [vmem:[#allocation36_spill] sm:$0xff] %v2190_v5 }
 0x1b1   : > { %796 = vrot.lane.b32.xlu1 %v2192_v12, %s1613_s6  ;;  %794 = vrot.lane.b32.xlu0 %v2194_v11, %s1613_s6 }
 0x1b3   : > { %v2200_v16 = vpop.permute.xlu1 %502  ;;  %v2202_v15 = vpop.permute.xlu0 %500 }
 0x1b4   : > { %2964 = vst [vmem:[#allocation37_spill] sm:$0xff] %v2200_v16  ;;  %2965 = vst [vmem:[#allocation38_spill] sm:$0xff] %v2202_v15 }
 0x1b5   : > { %818 = vrot.lane.b32.xlu1 %v2156_v9, %s1614_s8  ;;  %816 = vrot.lane.b32.xlu0 %v2158_v10, %s1614_s8 }
 0x1b7   : > { %v2208_v5 = vpop.permute.xlu1 %552  ;;  %v2210_v6 = vpop.permute.xlu0 %550 }
 0x1b8   : > { %2966 = vst [vmem:[#allocation39_spill] sm:$0xff] %v2208_v5  ;;  %2967 = vst [vmem:[#allocation40_spill] sm:$0xff] %v2210_v6 }
 0x1b9   : > { %822 = vrot.lane.b32.xlu1 %v2168_v13, %s1614_s8  ;;  %820 = vrot.lane.b32.xlu0 %v2170_v14, %s1614_s8 }
 0x1bb   : > { %v2216_v4 = vpop.permute.xlu1 %556  ;;  %v2218_v16 = vpop.permute.xlu0 %554 }
 0x1bc   : > { %2968 = vst [vmem:[#allocation41_spill] sm:$0xff] %v2216_v4  ;;  %2969 = vst [vmem:[#allocation42_spill] sm:$0xff] %v2218_v16 }
 0x1bd   : > { %826 = vrot.lane.b32.xlu1 %v2180_v8, %s1614_s8  ;;  %824 = vrot.lane.b32.xlu0 %v2182_v7, %s1614_s8 }
 0x1bf   : > { %v2224_v15 = vpop.permute.xlu1 %560  ;;  %v2226_v5 = vpop.permute.xlu0 %558 }
 0x1c0   : > { %2970 = vst [vmem:[#allocation43_spill] sm:$0xff] %v2224_v15  ;;  %2971 = vst [vmem:[#allocation44_spill] sm:$0xff] %v2226_v5 }
 0x1c1   : > { %830 = vrot.lane.b32.xlu1 %v2192_v12, %s1614_s8  ;;  %828 = vrot.lane.b32.xlu0 %v2194_v11, %s1614_s8 }
 0x1c3   : > { %v2232_v6 = vpop.permute.xlu1 %564  ;;  %v2234_v4 = vpop.permute.xlu0 %562 }
 0x1c4   : > { %2972 = vst [vmem:[#allocation45_spill] sm:$0xff] %v2232_v6  ;;  %2973 = vst [vmem:[#allocation46_spill] sm:$0xff] %v2234_v4 }
 0x1c5   : > { %852 = vrot.lane.b32.xlu1 %v2156_v9, %s1615_s9  ;;  %850 = vrot.lane.b32.xlu0 %v2158_v10, %s1615_s9 }
 0x1c7   : > { %v2240_v16 = vpop.permute.xlu1 %586  ;;  %v2242_v15 = vpop.permute.xlu0 %584 }
 0x1c8   : > { %2974 = vst [vmem:[#allocation47_spill] sm:$0xff] %v2240_v16  ;;  %2975 = vst [vmem:[#allocation48_spill] sm:$0xff] %v2242_v15 }
 0x1c9   : > { %856 = vrot.lane.b32.xlu1 %v2168_v13, %s1615_s9  ;;  %854 = vrot.lane.b32.xlu0 %v2170_v14, %s1615_s9 }
 0x1cb   : > { %v2248_v5 = vpop.permute.xlu1 %590  ;;  %v2250_v6 = vpop.permute.xlu0 %588 }
 0x1cc   : > { %2976 = vst [vmem:[#allocation49_spill] sm:$0xff] %v2248_v5  ;;  %2977 = vst [vmem:[#allocation50_spill] sm:$0xff] %v2250_v6 }
 0x1cd   : > { %860 = vrot.lane.b32.xlu1 %v2180_v8, %s1615_s9  ;;  %858 = vrot.lane.b32.xlu0 %v2182_v7, %s1615_s9 }
 0x1cf   : > { %v2256_v4 = vpop.permute.xlu1 %594  ;;  %v2258_v16 = vpop.permute.xlu0 %592 }
 0x1d0   : > { %2978 = vst [vmem:[#allocation51_spill] sm:$0xff] %v2256_v4  ;;  %2979 = vst [vmem:[#allocation52_spill] sm:$0xff] %v2258_v16 }
 0x1d1   : > { %864 = vrot.lane.b32.xlu1 %v2192_v12, %s1615_s9  ;;  %862 = vrot.lane.b32.xlu0 %v2194_v11, %s1615_s9 }
 0x1d3   : > { %v2264_v15 = vpop.permute.xlu1 %598  ;;  %v2266_v5 = vpop.permute.xlu0 %596 }
 0x1d4   : > { %2980 = vst [vmem:[#allocation53_spill] sm:$0xff] %v2264_v15  ;;  %2981 = vst [vmem:[#allocation54_spill] sm:$0xff] %v2266_v5 }
 0x1d5   : > { %886 = vrot.lane.b32.xlu1 %v2156_v9, %s1616_s10  ;;  %884 = vrot.lane.b32.xlu0 %v2158_v10, %s1616_s10 }
 0x1d7   : > { %v2272_v6 = vpop.permute.xlu1 %620  ;;  %v2274_v4 = vpop.permute.xlu0 %618 }
 0x1d8   : > { %2982 = vst [vmem:[#allocation55_spill] sm:$0xff] %v2272_v6  ;;  %2983 = vst [vmem:[#allocation56_spill] sm:$0xff] %v2274_v4 }
 0x1d9   : > { %890 = vrot.lane.b32.xlu1 %v2168_v13, %s1616_s10  ;;  %888 = vrot.lane.b32.xlu0 %v2170_v14, %s1616_s10 }
 0x1db   : > { %v2280_v16 = vpop.permute.xlu1 %624  ;;  %v2282_v15 = vpop.permute.xlu0 %622 }
 0x1dc   : > { %2984 = vst [vmem:[#allocation57_spill] sm:$0xff] %v2280_v16  ;;  %2985 = vst [vmem:[#allocation58_spill] sm:$0xff] %v2282_v15 }
 0x1dd   : > { %894 = vrot.lane.b32.xlu1 %v2180_v8, %s1616_s10  ;;  %892 = vrot.lane.b32.xlu0 %v2182_v7, %s1616_s10 }
 0x1df   : > { %v2288_v6 = vpop.permute.xlu1 %628  ;;  %v2290_v4 = vpop.permute.xlu0 %626 }
 0x1e0   : > { %2986 = vst [vmem:[#allocation59_spill] sm:$0xff] %v2288_v6  ;;  %2987 = vst [vmem:[#allocation60_spill] sm:$0xff] %v2290_v4  ;;  %v301_v4 = vstv %s300_s4  ;;  %s2458_s4 = sld [smem:[#allocation7 + $0x81]] }
 0x1e1   : > { %898 = vrot.lane.b32.xlu1 %v2192_v12, %s1616_s10  ;;  %896 = vrot.lane.b32.xlu0 %v2194_v11, %s1616_s10  ;;  %v303_v1 = vmul.f32 %v301_v4, %v1852_v17  ;;  %v307_v0 = vmul.f32 %v301_v4, %v1868_v21  ;;  %v306_v17 = vmul.f32 %v301_v4, %v1870_v22 }
 0x1e2   : > { %v308_v63 = vmul.f32 %v301_v4, %v1878_v24  ;;  %v2341_v21 = vmul.f32 %v533_v3, %v1974_v28  ;;  %v2344_v22 = vmul.f32 %v533_v3, %v1980_v29  ;;  %v2350_v24 = vmul.f32 %v533_v3, %v1982_v30 }
 0x1e3   : > { %v2296_v15 = vpop.permute.xlu1 %632  ;;  %v2298_v16 = vpop.permute.xlu0 %630  ;;  %v338_v30 = vmul.f32 %v335_v2, %v2010_v36 }
 0x1e4   : > { %2988 = vst [vmem:[#allocation61_spill] sm:$0xff] %v2296_v15  ;;  %2989 = vst [vmem:[#allocation62_spill] sm:$0xff] %v2298_v16  ;;  %v302_v15 = vmul.f32 %v301_v4, %v1854_v18  ;;  %v2318_v16 = vstv %s1370_s5  ;;  %v309_v18 = vmul.f32 %v301_v4, %v1876_v23  ;;  %v336_v23 = vmul.f32 %v335_v2, %v2002_v34  ;;  %s2488_s5 = scalar_lea.vmem [#allocation2], %s2435_s20  ;;  %s1380_s20 = sld [smem:[#allocation7 + $0x182]] }
 0x1e5   : > { %920 = vrot.lane.b32.xlu1 %v2156_v9, %s1617_s11  ;;  %918 = vrot.lane.b32.xlu0 %v2158_v10, %s1617_s11  ;;  %2992 = vst [vmem:[#allocation65_spill] sm:$0xff] %v2318_v16  ;;  %v2365_v28 = vmul.f32 %v2318_v16, %v2156_v9  ;;  %v2369_v29 = vmul.f32 %v2318_v16, %v2158_v10 }
 0x1e6   : > { %v2389_v36 = vmul.f32 %v2318_v16, %v2192_v12  ;;  %v344_v37 = vadd.f32 %v336_v23, %v302_v15  ;;  %v349_v23 = vadd.f32 %v341_v31, %v307_v0  ;;  %v437_v0 = vstv %s2347_s30  ;;  %s2558_s30 = sld [smem:[#allocation7 + $0x86]] }
 0x1e7   : > { %v2306_v6 = vpop.permute.xlu1 %654  ;;  %v2308_v5 = vpop.permute.xlu0 %652  ;;  %2994 = vst [vmem:[#allocation67_spill] sm:$0xff] %v2365_v28  ;;  %2995 = vst [vmem:[#allocation68_spill] sm:$0xff] %v2369_v29  ;;  %v2385_v28 = vmul.f32 %v2318_v16, %v2170_v14  ;;  %v343_v29 = vmul.f32 %v335_v2, %v2024_v39 }
 0x1e8   : > { %2990 = vst [vmem:[#allocation63_spill] sm:$0xff] %v2306_v6  ;;  %2991 = vst [vmem:[#allocation64_spill] sm:$0xff] %v2308_v5  ;;  %v305_v6 = vmul.f32 %v301_v4, %v1860_v19  ;;  %v304_v5 = vmul.f32 %v301_v4, %v1862_v20  ;;  %v337_v19 = vmul.f32 %v335_v2, %v2000_v33  ;;  %v369_v33 = vstv %s2304_s23  ;;  %s2497_s23 = sld [smem:[#allocation7 + $0x84]] }
 0x1e9   : > { %924 = vrot.lane.b32.xlu1 %v2168_v13, %s1617_s11  ;;  %922 = vrot.lane.b32.xlu0 %v2170_v14, %s1617_s11  ;;  %v2338_v20 = vmul.f32 %v533_v3, %v1972_v27  ;;  %v2361_v27 = vmul.f32 %v533_v3, %v1990_v32  ;;  %v2380_v32 = vmul.f32 %v2318_v16, %v2168_v13 }
 0x1ea   : > { %v345_v3 = vadd.f32 %v337_v19, %v303_v1  ;;  %v340_v4 = vmul.f32 %v335_v2, %v2018_v38  ;;  %2999 = vst [vmem:[#allocation72_spill] sm:$0xff] %v2385_v28  ;;  %3000 = vst [vmem:[#allocation73_spill] sm:$0xff] %v2389_v36  ;;  %v347_v38 = vadd.f32 %v339_v26, %v305_v6 }
 0x1eb   : > { %v2332_v60 = vpop.permute.xlu1 %658  ;;  %v2334_v59 = vpop.permute.xlu0 %656  ;;  %2998 = vst [vmem:[#allocation71_spill] sm:$0xff] %v2380_v32  ;;  %v371_v1 = vmul.f32 %v369_v33, %v2032_v41  ;;  %v370_v19 = vmul.f32 %v369_v33, %v2034_v42  ;;  %v373_v15 = vmul.f32 %v369_v33, %v2040_v43  ;;  %v346_v39 = vadd.f32 %v338_v30, %v304_v5 }
 0x1ec   : > { %2993 = vst [vmem:[#allocation66_spill] sm:$0xff] %v2334_v59  ;;  %v348_v36 = vadd.f32 %v340_v4, %v306_v17  ;;  %v374_v6 = vmul.f32 %v369_v33, %v2050_v46  ;;  %v377_v41 = vmul.f32 %v369_v33, %v2056_v47  ;;  %v376_v26 = vmul.f32 %v369_v33, %v2058_v48 }
 0x1ed   : > { %928 = vrot.lane.b32.xlu1 %v2180_v8, %s1617_s11  ;;  %926 = vrot.lane.b32.xlu0 %v2182_v7, %s1617_s11  ;;  %v351_v42 = vadd.f32 %v343_v29, %v309_v18  ;;  %v381_v46 = vadd.f32 %v373_v15, %v347_v38  ;;  %v3004_v15 = vld [vmem:[#allocation18_spill] sm:$0xff] }
 0x1ef   : > { %v2374_v34 = vpop.permute.xlu1 %662  ;;  %v2376_v35 = vpop.permute.xlu0 %660  ;;  %v385_v29 = vadd.f32 %v377_v41, %v351_v42  ;;  %v3007_v42 = vld [vmem:[#allocation21_spill] sm:$0xff] }
 0x1f0   : > { %2996 = vst [vmem:[#allocation69_spill] sm:$0xff] %v2374_v34  ;;  %2997 = vst [vmem:[#allocation70_spill] sm:$0xff] %v2376_v35  ;;  %v342_v35 = vmul.f32 %v335_v2, %v2026_v40  ;;  %v403_v34 = vstv %s2312_s28  ;;  %v372_v40 = vmul.f32 %v369_v33, %v2042_v44  ;;  %v375_v2 = vmul.f32 %v369_v33, %v2048_v45  ;;  %s2525_s28 = sld [smem:[#allocation7 + $0x85]] }
 0x1f1   : > { %932 = vrot.lane.b32.xlu1 %v2192_v12, %s1617_s11  ;;  %930 = vrot.lane.b32.xlu0 %v2194_v11, %s1617_s11  ;;  %v405_v43 = vmul.f32 %v403_v34, %v2064_v49  ;;  %v379_v44 = vadd.f32 %v371_v1, %v345_v3  ;;  %v378_v45 = vadd.f32 %v370_v19, %v344_v37  ;;  %v3003_v1 = vld [vmem:[#allocation17_spill] sm:$0xff] }
 0x1f2   : > { %v350_v59 = vadd.f32 %v342_v35, %v308_v63  ;;  %v404_v47 = vmul.f32 %v403_v34, %v2066_v50  ;;  %v380_v48 = vadd.f32 %v372_v40, %v346_v39  ;;  %v383_v5 = vadd.f32 %v375_v2, %v349_v23 }
 0x1f3   : > { %v2405_v28 = vpop.permute.xlu1 %666  ;;  %v2407_v32 = vpop.permute.xlu0 %664  ;;  %v407_v63 = vmul.f32 %v403_v34, %v2072_v51  ;;  %v406_v49 = vmul.f32 %v403_v34, %v2074_v52  ;;  %v413_v31 = vadd.f32 %v405_v43, %v379_v44  ;;  %v408_v33 = vmul.f32 %v403_v34, %v2082_v54 }
 0x1f4   : > { %v384_v30 = vadd.f32 %v376_v26, %v350_v59  ;;  %v411_v50 = vmul.f32 %v403_v34, %v2088_v55  ;;  %v471_v35 = vstv %s2394_s17  ;;  %v412_v51 = vadd.f32 %v404_v47, %v378_v45  ;;  %v3001_v55 = vld [vmem:[#allocation15_spill] sm:$0xff]  ;;  %s2655_s17 = sld [smem:[#allocation7 + $0x102]] }
 0x1f5   : > { %954 = vrot.lane.b32.xlu1 %v2156_v9, %s1618_s27  ;;  %952 = vrot.lane.b32.xlu0 %v2158_v10, %s1618_s27  ;;  %v382_v9 = vadd.f32 %v374_v6, %v348_v36  ;;  %v409_v10 = vmul.f32 %v403_v34, %v2080_v53  ;;  %v410_v52 = vmul.f32 %v403_v34, %v2090_v56  ;;  %v3002_v36 = vld [vmem:[#allocation16_spill] sm:$0xff]  ;;  %v3005_v34 = vld [vmem:[#allocation19_spill] sm:$0xff]  ;;  %v505_v2 = vstv %s2414_s19  ;;  %s1378_s19 = sld [smem:[#allocation7 + $0x180]] }
 0x1f6   : > { %v439_v53 = vmul.f32 %v437_v0, %v2096_v57  ;;  %v438_v59 = vmul.f32 %v437_v0, %v2098_v58  ;;  %v415_v54 = vadd.f32 %v407_v63, %v381_v46  ;;  %v414_v3 = vadd.f32 %v406_v49, %v380_v48  ;;  %v3006_v58 = vld [vmem:[#allocation20_spill] sm:$0xff]  ;;  %v3008_v46 = vld [vmem:[#allocation22_spill] sm:$0xff]  ;;  %v3009_v48 = vld [vmem:[#allocation23_spill] sm:$0xff] }
 0x1f7   : > { %v2423_v17 = vpop.permute.xlu1 %688  ;;  %v2425_v18 = vpop.permute.xlu0 %686  ;;  %v441_v4 = vmul.f32 %v437_v0, %v3001_v55  ;;  %v440_v37 = vmul.f32 %v437_v0, %v3002_v36  ;;  %v443_v19 = vmul.f32 %v437_v0, %v3003_v1  ;;  %v442_v56 = vmul.f32 %v437_v0, %v3004_v15  ;;  %v3016_v1 = vld [vmem:[#allocation27_spill] sm:$0xff]  ;;  %v3017_v15 = vld [vmem:[#allocation32_spill] sm:$0xff] }
 0x1f8   : > { %v445_v39 = vmul.f32 %v437_v0, %v3005_v34  ;;  %v416_v57 = vadd.f32 %v408_v33, %v382_v9  ;;  %v419_v23 = vadd.f32 %v411_v50, %v385_v29  ;;  %v444_v40 = vmul.f32 %v437_v0, %v3006_v58  ;;  %v3011_v33 = vld [vmem:[#allocation29_spill] sm:$0xff]  ;;  %v3019_v58 = vld [vmem:[#allocation35_spill] sm:$0xff] }
 0x1f9   : > { %958 = vrot.lane.b32.xlu1 %v2168_v13, %s1618_s27  ;;  %956 = vrot.lane.b32.xlu0 %v2170_v14, %s1618_s27  ;;  %v417_v14 = vadd.f32 %v409_v10, %v383_v5  ;;  %v418_v6 = vadd.f32 %v410_v52, %v384_v30  ;;  %v447_v41 = vadd.f32 %v439_v53, %v413_v31  ;;  %v3010_v30 = vld [vmem:[#allocation24_spill] sm:$0xff] }
 0x1fa   : > { %v446_v26 = vadd.f32 %v438_v59, %v412_v51  ;;  %v473_v43 = vmul.f32 %v471_v35, %v3007_v42  ;;  %v449_v44 = vadd.f32 %v441_v4, %v415_v54  ;;  %v448_v45 = vadd.f32 %v440_v37, %v414_v3  ;;  %v3012_v51 = vld [vmem:[#allocation30_spill] sm:$0xff]  ;;  %v3013_v59 = vld [vmem:[#allocation25_spill] sm:$0xff]  ;;  %v3015_v4 = vld [vmem:[#allocation31_spill] sm:$0xff] }
 0x1fb   : > { %v2442_v13 = vpop.permute.xlu1 %692  ;;  %v2444_v38 = vpop.permute.xlu0 %690  ;;  %v472_v47 = vmul.f32 %v471_v35, %v3008_v46  ;;  %v475_v5 = vmul.f32 %v471_v35, %v3009_v48  ;;  %v451_v49 = vadd.f32 %v443_v19, %v417_v14  ;;  %v450_v9 = vadd.f32 %v442_v56, %v416_v57  ;;  %v3014_v3 = vld [vmem:[#allocation26_spill] sm:$0xff]  ;;  %v3018_v57 = vld [vmem:[#allocation28_spill] sm:$0xff]  ;;  %v2494_v42 = vld [vmem:[%s2488_s5] sm:$0xff] }
 0x1fc   : > { %v453_v29 = vadd.f32 %v445_v39, %v419_v23  ;;  %v474_v10 = vmul.f32 %v471_v35, %v3010_v30  ;;  %v452_v31 = vadd.f32 %v444_v40, %v418_v6  ;;  %v507_v50 = vmul.f32 %v505_v2, %v3011_v33  ;;  %v3020_v6 = vld [vmem:[#allocation36_spill] sm:$0xff]  ;;  %v3021_v46 = vld [vmem:[#allocation37_spill] sm:$0xff] }
 0x1fd   : > { %962 = vrot.lane.b32.xlu1 %v2180_v8, %s1618_s27  ;;  %960 = vrot.lane.b32.xlu0 %v2182_v7, %s1618_s27  ;;  %v506_v52 = vmul.f32 %v505_v2, %v3012_v51  ;;  %v481_v53 = vadd.f32 %v473_v43, %v447_v41  ;;  %v477_v54 = vmul.f32 %v471_v35, %v3013_v59 }
 0x1fe   : > { %v476_v55 = vmul.f32 %v471_v35, %v3014_v3  ;;  %v509_v36 = vmul.f32 %v505_v2, %v3015_v4  ;;  %v480_v37 = vadd.f32 %v472_v47, %v446_v26  ;;  %v483_v14 = vadd.f32 %v475_v5, %v449_v44  ;;  %v2491_v26 = vld [vmem:[%s2488_s5 + $0x8] sm:$0xff]  ;;  %v3022_v5 = vld [vmem:[#allocation38_spill] sm:$0xff] }
 0x1ff   : > { %v2460_v0 = vpop.permute.xlu1 %696  ;;  %v2462_v63 = vpop.permute.xlu0 %694  ;;  %v479_v19 = vmul.f32 %v471_v35, %v3016_v1  ;;  %v508_v56 = vmul.f32 %v505_v2, %v3017_v15  ;;  %v482_v39 = vadd.f32 %v474_v10, %v448_v45  ;;  %v478_v23 = vmul.f32 %v471_v35, %v3018_v57  ;;  %v3027_v57 = vld [vmem:[#allocation43_spill] sm:$0xff] }
 0x200   : > { %v511_v40 = vmul.f32 %v505_v2, %v3019_v58  ;;  %v510_v41 = vmul.f32 %v505_v2, %v3020_v6  ;;  %v515_v43 = vadd.f32 %v507_v50, %v481_v53  ;;  %v514_v44 = vadd.f32 %v506_v52, %v480_v37 }
 0x201   : > { %966 = vrot.lane.b32.xlu1 %v2192_v12, %s1618_s27  ;;  %964 = vrot.lane.b32.xlu0 %v2194_v11, %s1618_s27  ;;  %v513_v47 = vmul.f32 %v505_v2, %v3021_v46  ;;  %v485_v35 = vadd.f32 %v477_v54, %v451_v49  ;;  %v484_v45 = vadd.f32 %v476_v55, %v450_v9  ;;  %v567_v50 = vstv %s2458_s4  ;;  %v2515_v9 = vld [vmem:[%s2488_s5 + $0x20] sm:$0xff]  ;;  %s1381_s4 = sld [smem:[#allocation7 + $0x183]] }
 0x202   : > { %v517_v48 = vadd.f32 %v509_v36, %v483_v14  ;;  %v512_v30 = vmul.f32 %v505_v2, %v3022_v5  ;;  %v487_v10 = vadd.f32 %v479_v19, %v453_v29  ;;  %v516_v33 = vadd.f32 %v508_v56, %v482_v39  ;;  %v2518_v54 = vld [vmem:[%s2488_s5 + $0x18] sm:$0xff]  ;;  %v3024_v14 = vld [vmem:[#allocation40_spill] sm:$0xff]  ;;  %v3031_v5 = vld [vmem:[#allocation47_spill] sm:$0xff] }
 0x203   : > { %v2480_v34 = vpop.permute.xlu1 %700  ;;  %v2482_v12 = vpop.permute.xlu0 %698  ;;  %v2511_v53 = vmul.f32 %v2318_v16, %v2194_v11  ;;  %v486_v59 = vadd.f32 %v478_v23, %v452_v31  ;;  %v519_v3 = vadd.f32 %v511_v40, %v485_v35  ;;  %v518_v4 = vadd.f32 %v510_v41, %v484_v45  ;;  %v3023_v31 = vld [vmem:[#allocation39_spill] sm:$0xff]  ;;  %v3026_v56 = vld [vmem:[#allocation42_spill] sm:$0xff]  ;;  %v2550_v35 = vld [vmem:[%s2488_s5 + $0x30] sm:$0xff] }
 0x204   : > { %v601_v49 = vstv %s2465_s29  ;;  %v521_v2 = vadd.f32 %v513_v47, %v487_v10  ;;  %v543_v29 = vadd.f32 %v2327_v62, %v515_v43  ;;  %v542_v55 = vadd.f32 %v2330_v61, %v514_v44  ;;  %v3025_v61 = vld [vmem:[#allocation41_spill] sm:$0xff]  ;;  %v3028_v43 = vld [vmem:[#allocation44_spill] sm:$0xff]  ;;  %v2547_v47 = vld [vmem:[%s2488_s5 + $0x38] sm:$0xff]  ;;  %s1382_s29 = sld [smem:[#allocation7 + $0x184]] }
 0x205   : > { %1016 = vrot.lane.b32.xlu1 %v2491_v26, %s1613_s6  ;;  %1014 = vrot.lane.b32.xlu0 %v2494_v42, %s1613_s6  ;;  %v2523_v36 = vstv %s2469_s22  ;;  %v520_v11 = vadd.f32 %v512_v30, %v486_v59  ;;  %v569_v37 = vmul.f32 %v567_v50, %v3023_v31  ;;  %v568_v1 = vmul.f32 %v567_v50, %v3024_v14  ;;  %v3030_v45 = vld [vmem:[#allocation46_spill] sm:$0xff]  ;;  %s1383_s22 = sld [smem:[#allocation7 + $0x185]] }
 0x206   : > { %v545_v62 = vadd.f32 %v2338_v20, %v517_v48  ;;  %v571_v19 = vmul.f32 %v567_v50, %v3025_v61  ;;  %v544_v15 = vadd.f32 %v2341_v21, %v516_v33  ;;  %v570_v39 = vmul.f32 %v567_v50, %v3026_v56  ;;  %v3029_v20 = vld [vmem:[#allocation45_spill] sm:$0xff]  ;;  %v3032_v33 = vld [vmem:[#allocation48_spill] sm:$0xff] }
 0x207   : > { %v2505_v51 = vpop.permute.xlu1 %722  ;;  %v2507_v52 = vpop.permute.xlu0 %720  ;;  %v573_v23 = vmul.f32 %v567_v50, %v3027_v57  ;;  %v547_v6 = vadd.f32 %v2344_v22, %v519_v3  ;;  %v546_v41 = vadd.f32 %v2350_v24, %v518_v4  ;;  %v572_v44 = vmul.f32 %v567_v50, %v3028_v43  ;;  %v3035_v43 = vld [vmem:[#allocation50_spill] sm:$0xff] }
 0x208   : > { %v575_v46 = vmul.f32 %v567_v50, %v3029_v20  ;;  %v549_v21 = vadd.f32 %v2353_v25, %v521_v2  ;;  %v574_v48 = vmul.f32 %v567_v50, %v3030_v45  ;;  %v603_v30 = vmul.f32 %v601_v49, %v3031_v5  ;;  %v3033_v2 = vld [vmem:[#allocation49_spill] sm:$0xff] }
 0x209   : > { %1020 = vrot.lane.b32.xlu1 %v2515_v9, %s1613_s6  ;;  %1018 = vrot.lane.b32.xlu0 %v2518_v54, %s1613_s6  ;;  %v2556_v10 = vstv %s2497_s23  ;;  %v577_v22 = vadd.f32 %v569_v37, %v543_v29  ;;  %v576_v24 = vadd.f32 %v568_v1, %v542_v55  ;;  %v548_v25 = vadd.f32 %v2361_v27, %v520_v11  ;;  %v3036_v29 = vld [vmem:[#allocation51_spill] sm:$0xff]  ;;  %v2574_v37 = vld [vmem:[%s2488_s5 + $0x50] sm:$0xff]  ;;  %s2834_s23 = scalar_lea.vmem [#allocation10], %s1353_s26  ;;  %s1394_s26 = sshll.u32 %s1663_s16, 10 }
 0x20a   : > { %v602_v50 = vmul.f32 %v601_v49, %v3032_v33  ;;  %v579_v59 = vadd.f32 %v571_v19, %v545_v62  ;;  %v578_v3 = vadd.f32 %v570_v39, %v544_v15  ;;  %v581_v4 = vadd.f32 %v573_v23, %v547_v6  ;;  %v2577_v27 = vld [vmem:[%s2488_s5 + $0x48] sm:$0xff]  ;;  %v3038_v23 = vld [vmem:[#allocation53_spill] sm:$0xff]  ;;  %s1384_s5 = sld [smem:[#allocation7 + $0x186]]  ;;  %s1228_s16 = scalar_lea.sflag [#allocation5], %s1800_s7 }
 0x20b   : > { %v2538_v58 = vpop.permute.xlu1 %726  ;;  %v2540_v40 = vpop.permute.xlu0 %724  ;;  %v605_v31 = vmul.f32 %v601_v49, %v3033_v2  ;;  %v580_v56 = vadd.f32 %v572_v44, %v546_v41  ;;  %v583_v57 = vadd.f32 %v575_v46, %v549_v21  ;;  %v604_v20 = vmul.f32 %v601_v49, %v3035_v43  ;;  %v3037_v62 = vld [vmem:[#allocation52_spill] sm:$0xff]  ;;  %v3039_v41 = vld [vmem:[#allocation54_spill] sm:$0xff]  ;;  %v3040_v46 = vld [vmem:[#allocation55_spill] sm:$0xff] }
 0x20c   : > { %v607_v55 = vmul.f32 %v601_v49, %v3036_v29  ;;  %v582_v11 = vadd.f32 %v574_v48, %v548_v25  ;;  %v611_v1 = vadd.f32 %v603_v30, %v577_v22  ;;  %v606_v19 = vmul.f32 %v601_v49, %v3037_v62  ;;  %v3041_v48 = vld [vmem:[#allocation56_spill] sm:$0xff]  ;;  %v3042_v30 = vld [vmem:[#allocation57_spill] sm:$0xff]  ;;  %v3043_v25 = vld [vmem:[#allocation58_spill] sm:$0xff] }
 0x20d   : > { %1024 = vrot.lane.b32.xlu1 %v2547_v47, %s1613_s6  ;;  %1022 = vrot.lane.b32.xlu0 %v2550_v35, %s1613_s6  ;;  %v2581_v15 = vstv %s2525_s28  ;;  %v610_v39 = vadd.f32 %v602_v50, %v576_v24  ;;  %v609_v6 = vmul.f32 %v601_v49, %v3038_v23  ;;  %v608_v44 = vmul.f32 %v601_v49, %v3039_v41  ;;  %v3044_v29 = vld [vmem:[#allocation59_spill] sm:$0xff]  ;;  %v3045_v62 = vld [vmem:[#allocation61_spill] sm:$0xff]  ;;  %s1242_s28 = sshll.u32 %s2834_s23, 4  ;;  %s2869_s28 = int_to_ptr.vmem [resolvable:$true] %s1242_s28 }
 0x20e   : > { %v637_v21 = vmul.f32 %v2523_v36, %v3040_v46  ;;  %v613_v45 = vadd.f32 %v605_v31, %v579_v59  ;;  %v636_v5 = vmul.f32 %v2523_v36, %v3041_v48  ;;  %v639_v22 = vmul.f32 %v2523_v36, %v3042_v30  ;;  %v3046_v31 = vld [vmem:[#allocation62_spill] sm:$0xff]  ;;  %v3047_v46 = vld [vmem:[#allocation63_spill] sm:$0xff] }
 0x20f   : > { %v2567_v14 = vpop.permute.xlu1 %730  ;;  %v2569_v61 = vpop.permute.xlu0 %728  ;;  %v638_v33 = vmul.f32 %v2523_v36, %v3043_v25  ;;  %v612_v50 = vadd.f32 %v604_v20, %v578_v3  ;;  %v615_v43 = vadd.f32 %v607_v55, %v581_v4  ;;  %v641_v49 = vmul.f32 %v2523_v36, %v3044_v29 }
 0x210   : > { %3034 = vst [vmem:[#allocation15_spill] sm:$0xff] %v2569_v61  ;;  %v643_v23 = vmul.f32 %v2523_v36, %v3045_v62  ;;  %v614_v59 = vadd.f32 %v606_v19, %v580_v56  ;;  %v642_v41 = vmul.f32 %v2523_v36, %v3046_v31  ;;  %v671_v48 = vmul.f32 %v2556_v10, %v3047_v46  ;;  %v3048_v56 = vld [vmem:[#allocation64_spill] sm:$0xff] }
 0x211   : > { %1028 = vrot.lane.b32.xlu1 %v2574_v37, %s1613_s6  ;;  %1026 = vrot.lane.b32.xlu0 %v2577_v27, %s1613_s6  ;;  %v2606_v30 = vstv %s2558_s30  ;;  %s2612_s6 = sld [smem:[#allocation7 + $0x101]]  ;;  %v617_v3 = vadd.f32 %v609_v6, %v583_v57  ;;  %v616_v4 = vadd.f32 %v608_v44, %v582_v11  ;;  %v645_v20 = vadd.f32 %v637_v21, %v611_v1  ;;  %v3049_v62 = vld [vmem:[#allocation60_spill] sm:$0xff]  ;;  %v3050_v44 = vld [vmem:[#allocation66_spill] sm:$0xff]  ;;  %v3051_v21 = vld [vmem:[#allocation69_spill] sm:$0xff] }
 0x212   : > { %v670_v55 = vmul.f32 %v2556_v10, %v3048_v56  ;;  %v644_v19 = vadd.f32 %v636_v5, %v610_v39  ;;  %v647_v25 = vadd.f32 %v639_v22, %v613_v45  ;;  %v646_v29 = vadd.f32 %v638_v33, %v612_v50 }
 0x213   : > { %v735_v2 = vpop.permute.xlu1 %734  ;;  %v733_v24 = vpop.permute.xlu0 %732  ;;  %v640_v31 = vmul.f32 %v2523_v36, %v3049_v62  ;;  %v649_v16 = vadd.f32 %v641_v49, %v615_v43  ;;  %v651_v8 = vadd.f32 %v643_v23, %v617_v3  ;;  %v677_v61 = vmul.f32 %v2556_v10, %v2405_v28  ;;  %v3052_v49 = vld [vmem:[#allocation70_spill] sm:$0xff] }
 0x214   : > { %v676_v57 = vmul.f32 %v2556_v10, %v2407_v32  ;;  %v650_v11 = vadd.f32 %v642_v41, %v616_v4  ;;  %v679_v1 = vadd.f32 %v671_v48, %v645_v20  ;;  %v705_v39 = vmul.f32 %v2581_v15, %v2423_v17 }
 0x215   : > { %1050 = vrot.lane.b32.xlu1 %v2491_v26, %s1614_s8  ;;  %1048 = vrot.lane.b32.xlu0 %v2494_v42, %s1614_s8  ;;  %v678_v36 = vadd.f32 %v670_v55, %v644_v19  ;;  %v673_v6 = vmul.f32 %v2556_v10, %v2332_v60  ;;  %v711_v28 = vmul.f32 %v2581_v15, %v2480_v34 }
 0x216   : > { %v710_v32 = vmul.f32 %v2581_v15, %v2482_v12  ;;  %v672_v17 = vmul.f32 %v2556_v10, %v3050_v44  ;;  %v675_v45 = vmul.f32 %v2556_v10, %v3051_v21  ;;  %v704_v5 = vmul.f32 %v2581_v15, %v2425_v18 }
 0x217   : > { %v785_v46 = vpop.permute.xlu1 %784  ;;  %v783_v7 = vpop.permute.xlu0 %782  ;;  %v739_v22 = vmul.f32 %v2606_v30, %v2505_v51  ;;  %v685_v50 = vadd.f32 %v677_v61, %v651_v8  ;;  %v684_v43 = vadd.f32 %v676_v57, %v650_v11  ;;  %v745_v34 = vmul.f32 %v2606_v30, %v735_v2 }
 0x218   : > { %v744_v12 = vmul.f32 %v2606_v30, %v733_v24  ;;  %v674_v23 = vmul.f32 %v2556_v10, %v3052_v49  ;;  %v713_v41 = vadd.f32 %v705_v39, %v679_v1  ;;  %v738_v48 = vmul.f32 %v2606_v30, %v2507_v52 }
 0x219   : > { %1054 = vrot.lane.b32.xlu1 %v2515_v9, %s1614_s8  ;;  %1052 = vrot.lane.b32.xlu0 %v2518_v54, %s1614_s8  ;;  %v2649_v3 = vstv %s2612_s6  ;;  %v707_v8 = vmul.f32 %v2581_v15, %v2442_v13  ;;  %v706_v18 = vmul.f32 %v2581_v15, %v2444_v38  ;;  %v719_v51 = vadd.f32 %v711_v28, %v685_v50 }
 0x21a   : > { %v718_v10 = vadd.f32 %v710_v32, %v684_v43  ;;  %v648_v61 = vadd.f32 %v640_v31, %v614_v59  ;;  %v681_v52 = vadd.f32 %v673_v6, %v647_v25  ;;  %v712_v2 = vadd.f32 %v704_v5, %v678_v36  ;;  %v3054_v6 = vld [vmem:[#allocation73_spill] sm:$0xff] }
 0x21b   : > { %v789_v60 = vpop.permute.xlu1 %788  ;;  %v787_v33 = vpop.permute.xlu0 %786  ;;  %v747_v24 = vadd.f32 %v739_v22, %v713_v41  ;;  %v680_v56 = vadd.f32 %v672_v17, %v646_v29  ;;  %v683_v55 = vadd.f32 %v675_v45, %v649_v16  ;;  %v753_v19 = vadd.f32 %v745_v34, %v719_v51  ;;  %v3055_v45 = vld [vmem:[#allocation68_spill] sm:$0xff]  ;;  %v3057_v51 = vld [vmem:[#allocation71_spill] sm:$0xff] }
 0x21c   : > { %v752_v62 = vadd.f32 %v744_v12, %v718_v10  ;;  %v746_v57 = vadd.f32 %v738_v48, %v712_v2  ;;  %v741_v11 = vmul.f32 %v2606_v30, %v2538_v58  ;;  %v740_v13 = vmul.f32 %v2606_v30, %v2540_v40  ;;  %v3053_v58 = vld [vmem:[#allocation67_spill] sm:$0xff] }
 0x21d   : > { %1058 = vrot.lane.b32.xlu1 %v2547_v47, %s1614_s8  ;;  %1056 = vrot.lane.b32.xlu0 %v2550_v35, %s1614_s8  ;;  %v682_v38 = vadd.f32 %v674_v23, %v648_v61  ;;  %v715_v59 = vadd.f32 %v707_v8, %v681_v52  ;;  %v714_v25 = vadd.f32 %v706_v18, %v680_v56  ;;  %v3059_v56 = vld [vmem:[#allocation33_spill] sm:$0xff] }
 0x21e   : > { %v709_v16 = vmul.f32 %v2581_v15, %v2460_v0  ;;  %v708_v29 = vmul.f32 %v2581_v15, %v2462_v63  ;;  %v775_v31 = vadd.f32 %v3053_v58, %v747_v24  ;;  %v801_v40 = vmul.f32 %v2649_v3, %v785_v46  ;;  %v3056_v46 = vld [vmem:[#allocation15_spill] sm:$0xff] }
 0x21f   : > { %v793_v4 = vpop.permute.xlu1 %792  ;;  %v791_v20 = vpop.permute.xlu0 %790  ;;  %v800_v1 = vmul.f32 %v2649_v3, %v783_v7  ;;  %v781_v28 = vadd.f32 %v3054_v6, %v753_v19  ;;  %v780_v44 = vadd.f32 %v2511_v53, %v752_v62  ;;  %v749_v17 = vadd.f32 %v741_v11, %v715_v59  ;;  %v3061_v62 = vld [vmem:[#allocation34_spill] sm:$0xff] }
 0x220   : > { %v748_v21 = vadd.f32 %v740_v13, %v714_v25  ;;  %v774_v63 = vadd.f32 %v3055_v45, %v746_v57  ;;  %v833_v7 = vstv %s2655_s17  ;;  %v743_v15 = vmul.f32 %v2606_v30, %v2567_v14  ;;  %v3058_v14 = vld [vmem:[#allocation72_spill] sm:$0xff]  ;;  %s2867_s17 = scalar_lea.hbm %s2920_s3, %s1394_s26 }
 0x221   : > { %1062 = vrot.lane.b32.xlu1 %v2574_v37, %s1614_s8  ;;  %1060 = vrot.lane.b32.xlu0 %v2577_v27, %s1614_s8  ;;  %v742_v5 = vmul.f32 %v2606_v30, %v3056_v46  ;;  %v717_v50 = vadd.f32 %v709_v16, %v683_v55  ;;  %v716_v43 = vadd.f32 %v708_v29, %v682_v38  ;;  %v3060_v55 = vld [vmem:[#allocation65_spill] sm:$0xff]  ;;  %s1373_s8 = sld [smem:[#allocation7 + $0x103]] }
 0x222   : > { %v803_v34 = vmul.f32 %v2649_v3, %v789_v60  ;;  %v802_v12 = vmul.f32 %v2649_v3, %v787_v33  ;;  %v809_v41 = vadd.f32 %v801_v40, %v775_v31  ;;  %v808_v48 = vadd.f32 %v800_v1, %v774_v63 }
 0x223   : > { %v797_v39 = vpop.permute.xlu1 %796  ;;  %v795_v36 = vpop.permute.xlu0 %794  ;;  %v777_v10 = vadd.f32 %v3057_v51, %v749_v17  ;;  %v776_v61 = vadd.f32 %v3058_v14, %v748_v21  ;;  %v751_v30 = vadd.f32 %v743_v15, %v717_v50  ;;  %v750_v60 = vadd.f32 %v742_v5, %v716_v43 }
 0x224   : > { %v807_v32 = vmul.f32 %v2649_v3, %v797_v39  ;;  %v806_v0 = vmul.f32 %v2649_v3, %v795_v36  ;;  %v771_v19 = vmul.f32 %v3060_v55, %v3059_v56  ;;  %v770_v57 = vmul.f32 %v3060_v55, %v3061_v62 }
 0x225   : > { %1084 = vrot.lane.b32.xlu1 %v2491_v26, %s1615_s9  ;;  %1082 = vrot.lane.b32.xlu0 %v2494_v42, %s1615_s9  ;;  %v811_v2 = vadd.f32 %v803_v34, %v777_v10  ;;  %v810_v24 = vadd.f32 %v802_v12, %v776_v61  ;;  %v805_v38 = vmul.f32 %v2649_v3, %v793_v4 }
 0x226   : > { %v815_v53 = vadd.f32 %v807_v32, %v781_v28  ;;  %v814_v22 = vadd.f32 %v806_v0, %v780_v44  ;;  %v804_v59 = vmul.f32 %v2649_v3, %v791_v20  ;;  %v779_v29 = vadd.f32 %v771_v19, %v751_v30 }
 0x227   : > { %v819_v49 = vpop.permute.xlu1 %818  ;;  %v817_v23 = vpop.permute.xlu0 %816  ;;  %v778_v58 = vadd.f32 %v770_v57, %v750_v60  ;;  %v867_v21 = vstv %s1373_s8  ;;  %s1530_s8 = scalar_lea.vmem %s2869_s28, 1024 }
 0x228   : > { %v835_v8 = vmul.f32 %v833_v7, %v819_v49  ;;  %v834_v18 = vmul.f32 %v833_v7, %v817_v23  ;;  %v813_v36 = vadd.f32 %v805_v38, %v779_v29  ;;  %p1531_p3 = scmp.ne.s32.totalorder %s2869_s28, %s1530_s8 }
 0x229   : > { %1088 = vrot.lane.b32.xlu1 %v2515_v9, %s1615_s9  ;;  %1086 = vrot.lane.b32.xlu0 %v2518_v54, %s1615_s9  ;;  %v812_v6 = vadd.f32 %v804_v59, %v778_v58 }
 0x22a   : > { %v843_v52 = vadd.f32 %v835_v8, %v809_v41  ;;  %v842_v33 = vadd.f32 %v834_v18, %v808_v48  ;;  %p1532_p8 = pnand %p1531_p3, %p3062_p10 }
 0x22b   : > { %v823_v11 = vpop.permute.xlu1 %822  ;;  %v821_v13 = vpop.permute.xlu0 %820 }
 0x22c   : > { %v837_v25 = vmul.f32 %v833_v7, %v823_v11  ;;  %v836_v16 = vmul.f32 %v833_v7, %v821_v13  ;;  %p1533_p9 = pneg %p1532_p8 }
 0x22d   : > { %1092 = vrot.lane.b32.xlu1 %v2547_v47, %s1615_s9  ;;  %1090 = vrot.lane.b32.xlu0 %v2550_v35, %s1615_s9 }
 0x22e   : > { %v845_v31 = vadd.f32 %v837_v25, %v811_v2  ;;  %v844_v40 = vadd.f32 %v836_v16, %v810_v24 }
 0x22f   : > { %v827_v1 = vpop.permute.xlu1 %826  ;;  %v825_v39 = vpop.permute.xlu0 %824 }
 0x230   : > { %v839_v4 = vmul.f32 %v833_v7, %v827_v1  ;;  %v838_v28 = vmul.f32 %v833_v7, %v825_v39 }
 0x231   : > { %1096 = vrot.lane.b32.xlu1 %v2574_v37, %s1615_s9  ;;  %1094 = vrot.lane.b32.xlu0 %v2577_v27, %s1615_s9  ;;  %s1374_s9 = sld [smem:[#allocation7 + $0x104]] }
 0x232   : > { %v847_v3 = vadd.f32 %v839_v4, %v813_v36  ;;  %v846_v20 = vadd.f32 %v838_v28, %v812_v6 }
 0x233   : > { %v831_v32 = vpop.permute.xlu1 %830  ;;  %v829_v44 = vpop.permute.xlu0 %828 }
 0x234   : > { %v841_v0 = vmul.f32 %v833_v7, %v831_v32  ;;  %v840_v17 = vmul.f32 %v833_v7, %v829_v44 }
 0x235   : > { %1118 = vrot.lane.b32.xlu1 %v2491_v26, %s1616_s10  ;;  %1116 = vrot.lane.b32.xlu0 %v2494_v42, %s1616_s10 }
 0x236   : > { %v849_v45 = vadd.f32 %v841_v0, %v815_v53  ;;  %v848_v63 = vadd.f32 %v840_v17, %v814_v22 }
 0x237   : > { %v853_v15 = vpop.permute.xlu1 %852  ;;  %v851_v46 = vpop.permute.xlu0 %850 }
 0x238   : > { %v869_v5 = vmul.f32 %v867_v21, %v853_v15  ;;  %v868_v50 = vmul.f32 %v867_v21, %v851_v46 }
 0x239   : > { %1122 = vrot.lane.b32.xlu1 %v2515_v9, %s1616_s10  ;;  %1120 = vrot.lane.b32.xlu0 %v2518_v54, %s1616_s10 }
 0x23a   : > { %v877_v7 = vadd.f32 %v869_v5, %v843_v52  ;;  %v876_v43 = vadd.f32 %v868_v50, %v842_v33  ;;  %v901_v52 = vstv %s1374_s9  ;;  %s1619_s9 = smov [#allocation10]  }
 0x23b   : > { %v857_v34 = vpop.permute.xlu1 %856  ;;  %v855_v12 = vpop.permute.xlu0 %854 }
 0x23c   : > { %v871_v49 = vmul.f32 %v867_v21, %v857_v34  ;;  %v870_v23 = vmul.f32 %v867_v21, %v855_v12 }
 0x23d   : > { %1126 = vrot.lane.b32.xlu1 %v2547_v47, %s1616_s10  ;;  %1124 = vrot.lane.b32.xlu0 %v2550_v35, %s1616_s10 }
 0x23e   : > { %v879_v53 = vadd.f32 %v871_v49, %v845_v31  ;;  %v878_v22 = vadd.f32 %v870_v23, %v844_v40 }
 0x23f   : > { %v861_v41 = vpop.permute.xlu1 %860  ;;  %v859_v48 = vpop.permute.xlu0 %858 }
 0x240   : > { %v873_v8 = vmul.f32 %v867_v21, %v861_v41  ;;  %v872_v18 = vmul.f32 %v867_v21, %v859_v48 }
 0x241   : > { %1130 = vrot.lane.b32.xlu1 %v2574_v37, %s1616_s10  ;;  %1128 = vrot.lane.b32.xlu0 %v2577_v27, %s1616_s10  ;;  %s1375_s10 = sld [smem:[#allocation7 + $0x105]] }
 0x242   : > { %v881_v51 = vadd.f32 %v873_v8, %v847_v3  ;;  %v880_v10 = vadd.f32 %v872_v18, %v846_v20 }
 0x243   : > { %v865_v14 = vpop.permute.xlu1 %864  ;;  %v863_v61 = vpop.permute.xlu0 %862 }
 0x244   : > { %v875_v30 = vmul.f32 %v867_v21, %v865_v14  ;;  %v874_v60 = vmul.f32 %v867_v21, %v863_v61 }
 0x245   : > { %1152 = vrot.lane.b32.xlu1 %v2491_v26, %s1617_s11  ;;  %1150 = vrot.lane.b32.xlu0 %v2494_v42, %s1617_s11 }
 0x246   : > { %v883_v33 = vadd.f32 %v875_v30, %v849_v45  ;;  %v882_v2 = vadd.f32 %v874_v60, %v848_v63 }
 0x247   : > { %v887_v24 = vpop.permute.xlu1 %886  ;;  %v885_v56 = vpop.permute.xlu0 %884  ;;  %v935_v3 = vstv %s1375_s10  ;;  %s1534_s10 = sshll.u32 %s1619_s9, 4  ;;  %s1535_s10 = int_to_ptr.vmem [resolvable:$false] %s1534_s10 }
 0x248   : > { %v903_v55 = vmul.f32 %v901_v52, %v887_v24  ;;  %v902_v19 = vmul.f32 %v901_v52, %v885_v56  ;;  %p1537_p6 = scmp.lt.s32.totalorder %s2869_s28, %s1535_s10 }
 0x249   : > { %1156 = vrot.lane.b32.xlu1 %v2515_v9, %s1617_s11  ;;  %1154 = vrot.lane.b32.xlu0 %v2518_v54, %s1617_s11 }
 0x24a   : > { %v911_v62 = vadd.f32 %v903_v55, %v877_v7  ;;  %v910_v57 = vadd.f32 %v902_v19, %v876_v43 }
 0x24b   : > { %v891_v11 = vpop.permute.xlu1 %890  ;;  %v889_v13 = vpop.permute.xlu0 %888 }
 0x24c   : > { %v905_v38 = vmul.f32 %v901_v52, %v891_v11  ;;  %v904_v59 = vmul.f32 %v901_v52, %v889_v13 }
 0x24d   : > { %1160 = vrot.lane.b32.xlu1 %v2547_v47, %s1617_s11  ;;  %1158 = vrot.lane.b32.xlu0 %v2550_v35, %s1617_s11 }
 0x24e   : > { %v913_v25 = vadd.f32 %v905_v38, %v879_v53  ;;  %v912_v16 = vadd.f32 %v904_v59, %v878_v22 }
 0x24f   : > { %v895_v29 = vpop.permute.xlu1 %894  ;;  %v893_v58 = vpop.permute.xlu0 %892 }
 0x250   : > { %v907_v31 = vmul.f32 %v901_v52, %v895_v29  ;;  %v906_v40 = vmul.f32 %v901_v52, %v893_v58 }
 0x251   : > { %1164 = vrot.lane.b32.xlu1 %v2574_v37, %s1617_s11  ;;  %1162 = vrot.lane.b32.xlu0 %v2577_v27, %s1617_s11  ;;  %s1376_s11 = sld [smem:[#allocation7 + $0x106]] }
 0x252   : > { %v915_v1 = vadd.f32 %v907_v31, %v881_v51  ;;  %v914_v39 = vadd.f32 %v906_v40, %v880_v10  ;;  %v997_v31 = vstv %s1378_s19 }
 0x253   : > { %v899_v36 = vpop.permute.xlu1 %898  ;;  %v897_v6 = vpop.permute.xlu0 %896 }
 0x254   : > { %v909_v4 = vmul.f32 %v901_v52, %v899_v36  ;;  %v908_v28 = vmul.f32 %v901_v52, %v897_v6 }
 0x255   : > { %1186 = vrot.lane.b32.xlu1 %v2491_v26, %s1618_s27  ;;  %1184 = vrot.lane.b32.xlu0 %v2494_v42, %s1618_s27 }
 0x256   : > { %v917_v20 = vadd.f32 %v909_v4, %v883_v33  ;;  %v916_v32 = vadd.f32 %v908_v28, %v882_v2  ;;  %v999_v4 = vmul.f32 %v997_v31, %v2491_v26  ;;  %v998_v28 = vmul.f32 %v997_v31, %v2494_v42 }
 0x257   : > { %v921_v44 = vpop.permute.xlu1 %920  ;;  %v919_v0 = vpop.permute.xlu0 %918  ;;  %v969_v51 = vstv %s1376_s11  ;;  %s1536_s11 = scalar_lea.vmem %s1535_s10, 2048 }
 0x258   : > { %v937_v17 = vmul.f32 %v935_v3, %v921_v44  ;;  %v936_v21 = vmul.f32 %v935_v3, %v919_v0  ;;  %p1538_p4 = scmp.lt.s32.totalorder %s1536_s11, %s1530_s8 }
 0x259   : > { %1190 = vrot.lane.b32.xlu1 %v2515_v9, %s1618_s27  ;;  %1188 = vrot.lane.b32.xlu0 %v2518_v54, %s1618_s27 }
 0x25a   : > { %v945_v45 = vadd.f32 %v937_v17, %v911_v62  ;;  %v944_v63 = vadd.f32 %v936_v21, %v910_v57  ;;  %p1539_p2 = por %p1538_p4, %p1537_p6 }
 0x25b   : > { %v925_v15 = vpop.permute.xlu1 %924  ;;  %v923_v46 = vpop.permute.xlu0 %922 }
 0x25c   : > { %v939_v5 = vmul.f32 %v935_v3, %v925_v15  ;;  %v938_v50 = vmul.f32 %v935_v3, %v923_v46  ;;  %v1000_v15 = vmul.f32 %v997_v31, %v2518_v54  ;;  %p1540_p0 = pnand %p1539_p2, %p1533_p9 }
 0x25d   : > { %1194 = vrot.lane.b32.xlu1 %v2547_v47, %s1618_s27  ;;  %1192 = vrot.lane.b32.xlu0 %v2550_v35, %s1618_s27 }
 0x25e   : > { %v947_v7 = vadd.f32 %v939_v5, %v913_v25  ;;  %v946_v43 = vadd.f32 %v938_v50, %v912_v16 }
 0x25f   : > { %v929_v34 = vpop.permute.xlu1 %928  ;;  %v927_v12 = vpop.permute.xlu0 %926 }
 0x260   : > { %v941_v49 = vmul.f32 %v935_v3, %v929_v34  ;;  %v940_v23 = vmul.f32 %v935_v3, %v927_v12  ;;  %v1003_v12 = vmul.f32 %v997_v31, %v2547_v47 }
 0x261   : > { %1198 = vrot.lane.b32.xlu1 %v2574_v37, %s1618_s27  ;;  %1196 = vrot.lane.b32.xlu0 %v2577_v27, %s1618_s27  ;;  %s1379_s27 = sld [smem:[#allocation7 + $0x181]] }
 0x262   : > { %v949_v53 = vadd.f32 %v941_v49, %v915_v1  ;;  %v948_v22 = vadd.f32 %v940_v23, %v914_v39  ;;  %v1002_v49 = vmul.f32 %v997_v31, %v2550_v35 }
 0x263   : > { %v933_v41 = vpop.permute.xlu1 %932  ;;  %v931_v48 = vpop.permute.xlu0 %930 }
 0x264   : > { %v943_v8 = vmul.f32 %v935_v3, %v933_v41  ;;  %v942_v18 = vmul.f32 %v935_v3, %v931_v48 }
 0x266   : > { %v951_v10 = vadd.f32 %v943_v8, %v917_v20  ;;  %v950_v14 = vadd.f32 %v942_v18, %v916_v32  ;;  %v1005_v18 = vmul.f32 %v997_v31, %v2574_v37 }
 0x267   : > { %v955_v61 = vpop.permute.xlu1 %954  ;;  %v953_v30 = vpop.permute.xlu0 %952  ;;  %v1031_v39 = vstv %s1379_s27 }
 0x268   : > { %v971_v60 = vmul.f32 %v969_v51, %v955_v61  ;;  %v970_v52 = vmul.f32 %v969_v51, %v953_v30 }
 0x26a   : > { %v979_v33 = vadd.f32 %v971_v60, %v945_v45  ;;  %v978_v2 = vadd.f32 %v970_v52, %v944_v63  ;;  %v1001_v63 = vmul.f32 %v997_v31, %v2515_v9 }
 0x26b   : > { %v959_v24 = vpop.permute.xlu1 %958  ;;  %v957_v56 = vpop.permute.xlu0 %956 }
 0x26c   : > { %v973_v55 = vmul.f32 %v969_v51, %v959_v24  ;;  %v972_v19 = vmul.f32 %v969_v51, %v957_v56  ;;  %v1007_v32 = vadd.f32 %v999_v4, %v979_v33  ;;  %v1006_v0 = vadd.f32 %v998_v28, %v978_v2 }
 0x26e   : > { %v981_v62 = vadd.f32 %v973_v55, %v947_v7  ;;  %v980_v57 = vadd.f32 %v972_v19, %v946_v43 }
 0x26f   : > { %v963_v11 = vpop.permute.xlu1 %962  ;;  %v961_v13 = vpop.permute.xlu0 %960 }
 0x270   : > { %v975_v38 = vmul.f32 %v969_v51, %v963_v11  ;;  %v974_v59 = vmul.f32 %v969_v51, %v961_v13  ;;  %v1009_v50 = vadd.f32 %v1001_v63, %v981_v62  ;;  %v1008_v7 = vadd.f32 %v1000_v15, %v980_v57 }
 0x272   : > { %v983_v25 = vadd.f32 %v975_v38, %v949_v53  ;;  %v982_v16 = vadd.f32 %v974_v59, %v948_v22 }
 0x273   : > { %v967_v29 = vpop.permute.xlu1 %966  ;;  %v965_v58 = vpop.permute.xlu0 %964 }
 0x274   : > { %v977_v40 = vmul.f32 %v969_v51, %v967_v29  ;;  %v976_v1 = vmul.f32 %v969_v51, %v965_v58  ;;  %v1011_v22 = vadd.f32 %v1003_v12, %v983_v25  ;;  %v1010_v41 = vadd.f32 %v1002_v49, %v982_v16 }
 0x275   : > { %v1004_v51 = vmul.f32 %v997_v31, %v2577_v27 }
 0x276   : > { %v985_v36 = vadd.f32 %v977_v40, %v951_v10  ;;  %v984_v6 = vadd.f32 %v976_v1, %v950_v14 }
 0x277   : > { %v1017_v3 = vpop.permute.xlu1 %1016  ;;  %v1015_v20 = vpop.permute.xlu0 %1014 }
 0x278   : > { %v1033_v44 = vmul.f32 %v1031_v39, %v1017_v3  ;;  %v1032_v17 = vmul.f32 %v1031_v39, %v1015_v20  ;;  %v1013_v61 = vadd.f32 %v1005_v18, %v985_v36  ;;  %v1012_v30 = vadd.f32 %v1004_v51, %v984_v6 }
 0x279   : > { %v1065_v3 = vstv %s1380_s20  ;;  %v2808_v18 = vstv %s1384_s5 }
 0x27a   : > { %v2762_v21 = vadd.f32 %v1033_v44, %v1007_v32  ;;  %v2764_v45 = vadd.f32 %v1032_v17, %v1006_v0  ;;  %v1099_v44 = vstv %s1381_s4 }
 0x27b   : > { %v1021_v46 = vpop.permute.xlu1 %1020  ;;  %v1019_v5 = vpop.permute.xlu0 %1018 }
 0x27c   : > { %v1035_v26 = vmul.f32 %v1031_v39, %v1021_v46  ;;  %v1034_v42 = vmul.f32 %v1031_v39, %v1019_v5  ;;  %v2800_v46 = vstv %s1382_s29 }
 0x27e   : > { %v2768_v43 = vadd.f32 %v1035_v26, %v1009_v50  ;;  %v2770_v34 = vadd.f32 %v1034_v42, %v1008_v7  ;;  %v2804_v26 = vstv %s1383_s22 }
 0x27f   : > { %v1025_v23 = vpop.permute.xlu1 %1024  ;;  %v1023_v53 = vpop.permute.xlu0 %1022 }
 0x280   : > { %v1037_v9 = vmul.f32 %v1031_v39, %v1025_v23  ;;  %v1036_v54 = vmul.f32 %v1031_v39, %v1023_v53 }
 0x282   : > { %v2774_v48 = vadd.f32 %v1037_v9, %v1011_v22  ;;  %v2776_v8 = vadd.f32 %v1036_v54, %v1010_v41 }
 0x283   : > { %v1029_v10 = vpop.permute.xlu1 %1028  ;;  %v1027_v14 = vpop.permute.xlu0 %1026 }
 0x284   : > { %v1039_v47 = vmul.f32 %v1031_v39, %v1029_v10  ;;  %v1038_v35 = vmul.f32 %v1031_v39, %v1027_v14 }
 0x286   : > { %v2780_v60 = vadd.f32 %v1039_v47, %v1013_v61  ;;  %v2782_v52 = vadd.f32 %v1038_v35, %v1012_v30 }
 0x287   : > { %v1051_v33 = vpop.permute.xlu1 %1050  ;;  %v1049_v2 = vpop.permute.xlu0 %1048 }
 0x288   : > { %v1067_v20 = vmul.f32 %v1065_v3, %v1051_v33  ;;  %v1066_v32 = vmul.f32 %v1065_v3, %v1049_v2 }
 0x28a   : > { %v1075_v5 = vadd.f32 %v1067_v20, %v2762_v21  ;;  %v1074_v50 = vadd.f32 %v1066_v32, %v2764_v45 }
 0x28b   : > { %v1055_v24 = vpop.permute.xlu1 %1054  ;;  %v1053_v56 = vpop.permute.xlu0 %1052 }
 0x28c   : > { %v1069_v12 = vmul.f32 %v1065_v3, %v1055_v24  ;;  %v1068_v49 = vmul.f32 %v1065_v3, %v1053_v56 }
 0x28e   : > { %v1077_v47 = vadd.f32 %v1069_v12, %v2768_v43  ;;  %v1076_v30 = vadd.f32 %v1068_v49, %v2770_v34 }
 0x28f   : > { %v1059_v55 = vpop.permute.xlu1 %1058  ;;  %v1057_v19 = vpop.permute.xlu0 %1056 }
 0x290   : > { %v1071_v23 = vmul.f32 %v1065_v3, %v1059_v55  ;;  %v1070_v53 = vmul.f32 %v1065_v3, %v1057_v19 }
 0x292   : > { %v1079_v35 = vadd.f32 %v1071_v23, %v2774_v48  ;;  %v1078_v33 = vadd.f32 %v1070_v53, %v2776_v8 }
 0x293   : > { %v2784_v62 = vpop.permute.xlu1 %1062  ;;  %v2786_v37 = vpop.permute.xlu0 %1060 }
 0x294   : > { %v1073_v19 = vmul.f32 %v1065_v3, %v2784_v62 }
 0x297   : > { %v1085_v27 = vpop.permute.xlu1 %1084  ;;  %v1083_v57 = vpop.permute.xlu0 %1082 }
 0x298   : > { %v1101_v63 = vmul.f32 %v1099_v44, %v1085_v27  ;;  %v1100_v15 = vmul.f32 %v1099_v44, %v1083_v57  ;;  %v1072_v27 = vmul.f32 %v1065_v3, %v2786_v37 }
 0x29a   : > { %v1109_v41 = vadd.f32 %v1101_v63, %v1075_v5  ;;  %v1108_v54 = vadd.f32 %v1100_v15, %v1074_v50 }
 0x29b   : > { %v1089_v11 = vpop.permute.xlu1 %1088  ;;  %v1087_v13 = vpop.permute.xlu0 %1086 }
 0x29c   : > { %v1103_v21 = vmul.f32 %v1099_v44, %v1089_v11  ;;  %v1102_v51 = vmul.f32 %v1099_v44, %v1087_v13 }
 0x29e   : > { %v1111_v13 = vadd.f32 %v1103_v21, %v1077_v47  ;;  %v1110_v43 = vadd.f32 %v1102_v51, %v1076_v30 }
 0x29f   : > { %v1093_v38 = vpop.permute.xlu1 %1092  ;;  %v1091_v59 = vpop.permute.xlu0 %1090 }
 0x2a0   : > { %v1105_v2 = vmul.f32 %v1099_v44, %v1093_v38  ;;  %v1104_v24 = vmul.f32 %v1099_v44, %v1091_v59 }
 0x2a2   : > { %v1112_v37 = vadd.f32 %v1104_v24, %v1078_v33 }
 0x2a3   : > { %v2788_v25 = vpop.permute.xlu1 %1096  ;;  %v2790_v16 = vpop.permute.xlu0 %1094 }
 0x2a7   : > { %v1119_v29 = vpop.permute.xlu1 %1118  ;;  %v1117_v58 = vpop.permute.xlu0 %1116 }
 0x2a8   : > { %v1135_v22 = vmul.f32 %v2800_v46, %v1119_v29  ;;  %v1134_v9 = vmul.f32 %v2800_v46, %v1117_v58 }
 0x2aa   : > { %v1143_v56 = vadd.f32 %v1135_v22, %v1109_v41  ;;  %v1142_v55 = vadd.f32 %v1134_v9, %v1108_v54 }
 0x2ab   : > { %v1123_v31 = vpop.permute.xlu1 %1122  ;;  %v1121_v40 = vpop.permute.xlu0 %1120 }
 0x2ac   : > { %v1137_v57 = vmul.f32 %v2800_v46, %v1123_v31  ;;  %v1136_v11 = vmul.f32 %v2800_v46, %v1121_v40 }
 0x2ae   : > { %v1144_v3 = vadd.f32 %v1136_v11, %v1110_v43 }
 0x2af   : > { %v2792_v1 = vpop.permute.xlu1 %1126  ;;  %v2794_v39 = vpop.permute.xlu0 %1124 }
 0x2b0   : > { %v1139_v31 = vmul.f32 %v2800_v46, %v2792_v1  ;;  %v1138_v40 = vmul.f32 %v2800_v46, %v2794_v39  ;;  %v1081_v1 = vadd.f32 %v1073_v19, %v2780_v60  ;;  %v1080_v39 = vadd.f32 %v1072_v27, %v2782_v52 }
 0x2b3   : > { %v2796_v36 = vpop.permute.xlu1 %1130  ;;  %v2798_v6 = vpop.permute.xlu0 %1128 }
 0x2b4   : > { %v1140_v23 = vmul.f32 %v2800_v46, %v2798_v6 }
 0x2b7   : > { %v1153_v4 = vpop.permute.xlu1 %1152  ;;  %v1151_v28 = vpop.permute.xlu0 %1150 }
 0x2b8   : > { %v1169_v45 = vmul.f32 %v2804_v26, %v1153_v4  ;;  %v1168_v10 = vmul.f32 %v2804_v26, %v1151_v28  ;;  %v1113_v4 = vadd.f32 %v1105_v2, %v1079_v35  ;;  %v1145_v28 = vadd.f32 %v1137_v57, %v1111_v13 }
 0x2ba   : > { %v1177_v29 = vadd.f32 %v1169_v45, %v1143_v56  ;;  %v1176_v34 = vadd.f32 %v1168_v10, %v1142_v55 }
 0x2bb   : > { %v1157_v0 = vpop.permute.xlu1 %1156  ;;  %v1155_v17 = vpop.permute.xlu0 %1154 }
 0x2bc   : > { %v1171_v8 = vmul.f32 %v2804_v26, %v1157_v0  ;;  %v1170_v38 = vmul.f32 %v2804_v26, %v1155_v17  ;;  %v1107_v0 = vmul.f32 %v1099_v44, %v2788_v25  ;;  %v1106_v17 = vmul.f32 %v1099_v44, %v2790_v16 }
 0x2bd   : > { %v1147_v44 = vadd.f32 %v1139_v31, %v1113_v4 }
 0x2be   : > { %v1179_v12 = vadd.f32 %v1171_v8, %v1145_v28  ;;  %v1178_v49 = vadd.f32 %v1170_v38, %v1144_v3  ;;  %v1115_v9 = vadd.f32 %v1107_v0, %v1081_v1  ;;  %v1114_v41 = vadd.f32 %v1106_v17, %v1080_v39 }
 0x2bf   : > { %v1161_v7 = vpop.permute.xlu1 %1160  ;;  %v1159_v42 = vpop.permute.xlu0 %1158 }
 0x2c0   : > { %v1173_v63 = vmul.f32 %v2804_v26, %v1161_v7  ;;  %v1172_v15 = vmul.f32 %v2804_v26, %v1159_v42  ;;  %v1146_v7 = vadd.f32 %v1138_v40, %v1112_v37  ;;  %v1141_v42 = vmul.f32 %v2800_v46, %v2796_v36 }
 0x2c1   : > { %v1148_v10 = vadd.f32 %v1140_v23, %v1114_v41 }
 0x2c2   : > { %v1181_v54 = vadd.f32 %v1173_v63, %v1147_v44  ;;  %v1180_v60 = vadd.f32 %v1172_v15, %v1146_v7  ;;  %v1149_v46 = vadd.f32 %v1141_v42, %v1115_v9 }
 0x2c3   : > { %v1165_v14 = vpop.permute.xlu1 %1164  ;;  %v1163_v61 = vpop.permute.xlu0 %1162 }
 0x2c4   : > { %v1175_v52 = vmul.f32 %v2804_v26, %v1165_v14  ;;  %v1174_v45 = vmul.f32 %v2804_v26, %v1163_v61 }
 0x2c6   : > { %v1183_v61 = vadd.f32 %v1175_v52, %v1149_v46  ;;  %v1182_v35 = vadd.f32 %v1174_v45, %v1148_v10 }
 0x2c7   : > { %v1187_v58 = vpop.permute.xlu1 %1186  ;;  %v1185_v48 = vpop.permute.xlu0 %1184 }
 0x2c8   : > { %v1203_v59 = vmul.f32 %v2808_v18, %v1187_v58  ;;  %v1202_v62 = vmul.f32 %v2808_v18, %v1185_v48 }
 0x2ca   : > { %v1211_v20 = vadd.f32 %v1203_v59, %v1177_v29  ;;  %v1210_v32 = vadd.f32 %v1202_v62, %v1176_v34 }
 0x2cb   : > { %v1191_v5 = vpop.permute.xlu1 %1190  ;;  %v1189_v50 = vpop.permute.xlu0 %1188 }
 0x2cc   : > { %1220 = vst.msk [vmem:[%s2834_s23 + $0x8] sm:$0xff] %vm1218_vm3, %v1211_v20  ;;  %1219 = vst.msk [vmem:[%s2834_s23] sm:$0xff] %vm1218_vm3, %v1210_v32  ;;  %v1205_v25 = vmul.f32 %v2808_v18, %v1191_v5  ;;  %v1204_v16 = vmul.f32 %v2808_v18, %v1189_v50 }
 0x2ce   : > { %v1213_v53 = vadd.f32 %v1205_v25, %v1179_v12  ;;  %v1212_v22 = vadd.f32 %v1204_v16, %v1178_v49 }
 0x2cf   : > { %v1195_v21 = vpop.permute.xlu1 %1194  ;;  %v1193_v51 = vpop.permute.xlu0 %1192 }
 0x2d0   : > { %1222 = vst.msk [vmem:[%s2834_s23 + $0x18] sm:$0xff] %vm1218_vm3, %v1213_v53  ;;  %1221 = vst.msk [vmem:[%s2834_s23 + $0x10] sm:$0xff] %vm1218_vm3, %v1212_v22  ;;  %v1207_v36 = vmul.f32 %v2808_v18, %v1195_v21  ;;  %v1206_v6 = vmul.f32 %v2808_v18, %v1193_v51 }
 0x2d2   : > { %v1215_v47 = vadd.f32 %v1207_v36, %v1181_v54  ;;  %v1214_v30 = vadd.f32 %v1206_v6, %v1180_v60 }
 0x2d3   : > { %v1199_v14 = vpop.permute.xlu1 %1198  ;;  %v1197_v26 = vpop.permute.xlu0 %1196 }
 0x2d4   : > { %1224 = vst.msk [vmem:[%s2834_s23 + $0x28] sm:$0xff] %vm1218_vm3, %v1215_v47  ;;  %1223 = vst.msk [vmem:[%s2834_s23 + $0x20] sm:$0xff] %vm1218_vm3, %v1214_v30  ;;  %v1209_v33 = vmul.f32 %v2808_v18, %v1199_v14  ;;  %v1208_v2 = vmul.f32 %v2808_v18, %v1197_v26 }
 0x2d6   : > { %v1217_v24 = vadd.f32 %v1209_v33, %v1183_v61  ;;  %v1216_v56 = vadd.f32 %v1208_v2, %v1182_v35 }
 0x2d8   : > { %1226 = vst.msk [vmem:[%s2834_s23 + $0x38] sm:$0xff] %vm1218_vm3, %v1217_v24  ;;  %1225 = vst.msk [vmem:[%s2834_s23 + $0x30] sm:$0xff] %vm1218_vm3, %v1216_v56 }
 0x2d9   : > { %1543 = shalt.err (!%p1540_p0)
}
 0x2da   : > { %s1544_s19 = scalar_lea.hbm %s2867_s17, 1024  ;;  %s1548_s4 = scalar_lea.hbm %s2920_s3, 2048 }
 0x2db   : > { %p1545_p7 = scmp.ne.s32.totalorder %s2867_s17, %s1544_s19  ;;  %p1549_p11 = scmp.lt.u32.totalorder %s2867_s17, %s2920_s3 }
 0x2dc   : > { %p1550_p12 = scmp.lt.u32.totalorder %s1548_s4, %s1544_s19  ;;  %p1552_p3 = scmp.lt.u32.totalorder %s1544_s19, %s2867_s17 }
 0x2dd   : > { %p1546_p1 = pnand %p1545_p7, %p3062_p10 }
 0x2de   : > { %p1551_p13 = por %p1550_p12, %p1549_p11 }
 0x2df   : > { %p1547_p5 = pneg %p1546_p1 }
 0x2e0   : > { %p1553_p8 = por %p1552_p3, %p1551_p13 }
 0x2e2   : > { %p1554_p9 = pnand %p1553_p8, %p1547_p5 }
 0x2e4   : > { %1557 = shalt.err (!%p1554_p9)
}
 0x2e5   : > { %s1620_s5 = smov 128   ;;  %s1621_s23 = smov 8  }
 0x2e6   : > { %1405 = dma.vmem_to_hbm [thread:$0]  (%p3062_p10), %s2869_s28, 1024, %s2867_s17, %s1228_s16, %s1620_s5, %s1620_s5, %s1621_s23  }
 0x2e7 PF: > { %s1257_s26 = sand.u32 1, %s1592_s12   ;;  %p3063_p6 = scmp.ne.s32.totalorder %s2931_s25, 0 }
 0x2e8   : > { %p3064_p4 = scmp.ge.s32.totalorder %s1604_s15, 2  ;;  %s1258_s30 = scalar_lea.sflag [#allocation5], %s1257_s26 }
 0x2ea   : > { %p1419_p2 = pnand %p3064_p4, %p3063_p6 }
 0x2ec   : > { %1587 = dma.done.wait (!%p1419_p2), %s1258_s30, 1024  }
 0x2ed   : > { %1589 = vsyncadd (!%p1419_p2), %s1258_s30, 4294966272  ;;  %p18_p0 = scmp.ge.s32.totalorder %s1667_s18, 4   ;;  %s3065_s12 = smov %s1596_s13 }
 0x2ee   : > { %s3066_s13 = smov %s1600_s14  ;;  %s3067_s14 = smov %s1679_s21 }
 0x2ef   : > { %s3068_s15 = smov %s1667_s18  ;;  %20 = sbr.rel (!%p18_p0) target bundleno = 7 (0x7), region = 90 }
 0x2f6   :  { %1263 = vsyncpa [#allocation4], 1 }
 0x2f7   :  { %1265 = vsyncpa [#allocation4 + $0x1], 1 }
 0x2f8   :  { %1266 = vsyncpa [#allocation5], 1 }
 0x2f9   :  { %1268 = vsyncpa [#allocation5 + $0x1], 1 }
 0x2fa   :  { %1269 = vsyncpa [#allocation6], 1 }
 0x2fb   :  { %1271 = vsyncpa [#allocation6 + $0x1], 1 }
 0x2fc   :  { %1272 = vsyncpa [#allocation8], 1 }

</bundles_post_ra>
